<compile_context>
chip_gen: v5e
topology: v5e:2x2
jax: 0.10.0
libtpu: 0.0.40
codegen_flags: <defaults>
</compile_context>

<pallas_src>
import functools

import jax
import jax.numpy as jnp
from jax.experimental import pallas as pl
from jax.experimental.pallas import tpu as pltpu

EPS = 1e-5
LANES = 128


# --------------------------------------------------------------------------
# Pallas kernel: BN affine (+ReLU) + banded conv (+bias, +residual)
#                [+ fused 1x1 proj] [+ fused partial BN stats of the output]
# --------------------------------------------------------------------------
def _conv_block_kernel(*refs, relu, add_res, with_proj, emit_stats, H, KH):
    """Ref layout (per grid step, all VMEM):

      x:      (Mt, W*Cin)            f32 / bf16   Mt = images_per_step * H
      scale:  (1, W*Cin)             f32          BN scale, tiled per lane
      shift:  (1, W*Cin)             f32          BN shift, tiled per lane
      wcat:   (KH*W*Cin, W*Cout)     bf16         concatenated banded weight
      bias:   (1, W*Cout)            f32
      [res:   (Mt, W*Cout)           bf16/f32]    residual to add
      [pscale:(1, W*Cin)             f32]         proj-BN scale (per lane)
      [wproj: (W*Cin, W*Cout)        bf16]        block-diag 1x1 weight
      [pbias: (1, W*Cout)            f32]         proj bias (+ BN shift folded)
      out:    (Mt, W*Cout)           bf16/f32
      [proj:  (Mt, W*Cout)           bf16]
      [stats: (1, 2, W*Cout)         f32]         per-lane (sum, sum of sq)
      pad:    (Mt + 2*ph, W*Cin)     f32          scratch (never zeroed)
    """
    it = iter(refs)
    x_ref = next(it)
    scale_ref = next(it)
    shift_ref = next(it)
    wcat_ref = next(it)
    bias_ref = next(it)
    res_ref = next(it) if add_res else None
    if with_proj:
        pscale_ref = next(it)
        wproj_ref = next(it)
        pbias_ref = next(it)
    out_ref = next(it)
    proj_ref = next(it) if with_proj else None
    stats_ref = next(it) if emit_stats else None
    pad_ref = next(it)

    Mt, wcin = x_ref.shape
    ph = KH // 2

    x = x_ref[...].astype(jnp.float32)

    # ---- BatchNorm affine (+ReLU); batch stats were reduced beforehand -----
    a = x * scale_ref[...] + shift_ref[...]
    if relu:
        a = jnp.maximum(a, 0.0)

    # ---- stage rows in VMEM so the KH vertically shifted taps are cheap
    #      ref slices.  Halo rows of the scratch are NEVER read unmasked (the
    #      row mask below zeroes them), so no zero-init and safe reuse across
    #      grid steps.
    pad_ref[ph:ph + Mt, :] = a

    # local row index inside each image: masks rows whose tap falls outside
    # the image (conv zero-padding in H, and isolation between the images
    # stacked along the flattened M dimension).
    hrow = jax.lax.broadcasted_iota(jnp.int32, (Mt, 1), 0) % H

    taps = []
    for ky in range(KH):
        d = ky - ph
        t = pad_ref[ky:ky + Mt, :]
        if d != 0:
            valid = (hrow + d >= 0) & (hrow + d < H)
            t = jnp.where(valid, t, 0.0)
        taps.append(t)

    if wcin % LANES == 0 and KH > 1:
        # one MXU matmul: M = Mt, K = KH*W*Cin, N = W*Cout (bf16 in, f32 acc)
        tap_cat = jnp.concatenate(taps, axis=-1).astype(jnp.bfloat16)
        acc = jnp.dot(tap_cat, wcat_ref[...],
                      preferred_element_type=jnp.float32)
    else:
        # fallback for lane-unaligned Cin: KH banded matmuls
        acc = jnp.zeros(out_ref.shape, jnp.float32)
        for ky in range(KH):
            acc = acc + jnp.dot(taps[ky].astype(jnp.bfloat16),
                                wcat_ref[ky * wcin:(ky + 1) * wcin, :],
                                preferred_element_type=jnp.float32)

    acc = acc + bias_ref[...]
    if add_res:
        acc = acc + res_ref[...].astype(jnp.float32)
    out_ref[...] = acc.astype(out_ref.dtype)

    if emit_stats:
        # fused per-lane partial sums of the (post-residual) output for the
        # next layer's BatchNorm; the tiny fold over grid steps / W runs in
        # the wrapper.  Avoids a full HBM re-read of the intermediate.
        stats_ref[0, 0:1, :] = jnp.sum(acc, axis=0, keepdims=True)
        stats_ref[0, 1:2, :] = jnp.sum(acc * acc, axis=0, keepdims=True)

    if with_proj:
        # fused 1x1 proj branch: BN scale applied in f32, BN shift folded into
        # pbias in the wrapper; x is read from HBM only once.
        px = (x * pscale_ref[...]).astype(jnp.bfloat16)
        pr = jnp.dot(px, wproj_ref[...], preferred_element_type=jnp.float32)
        proj_ref[...] = (pr + pbias_ref[...]).astype(proj_ref.dtype)


# --------------------------------------------------------------------------
# Wrapper for one fused batchconv block
# --------------------------------------------------------------------------
def _pick_images_per_step(n_imgs, h, target_rows=256):
    """Images per grid step.  Aim for ~256 rows per step (fills the 256-deep
    v6e/v7x MXU, >=128 for v5e) while keeping whole images per block; larger
    batches naturally give >=2 'parallel' steps for v7x's two TensorCores."""
    per = max(1, min(n_imgs, max(1, target_rows // h)))
    while n_imgs % per:
        per -= 1
    return per


def conv_block(x_rows, scale, shift, wcat, bias_row, *, H,
               residual=None, proj_scale=None, proj_w=None, proj_bias=None,
               relu=True, out_dtype=jnp.bfloat16, emit_stats=True):
    """One fused batchconv block on lane-dense (N*H, W*C) activation rows.

    Returns (out, proj, stats); proj/stats are None unless requested."""
    M, wcin = x_rows.shape
    kwcin, wcout = wcat.shape
    assert kwcin % wcin == 0
    KH = kwcin // wcin
    assert KH % 2 == 1, "odd kernel size expected (padding = sz // 2)"
    ph = KH // 2
    assert M % H == 0
    per = _pick_images_per_step(M // H, H)
    Mt = per * H
    G = M // Mt

    add_res = residual is not None
    with_proj = proj_w is not None

    inputs = [x_rows, scale, shift, wcat.astype(jnp.bfloat16), bias_row]
    in_specs = [
        pl.BlockSpec((Mt, wcin), lambda i: (i, 0)),
        pl.BlockSpec((1, wcin), lambda i: (0, 0)),
        pl.BlockSpec((1, wcin), lambda i: (0, 0)),
        # constant-index weight (fetched once).
        # TODO(synk): for large W, tile the banded weight over x / request
        # single-buffering to trim VMEM on v7x (64 MiB physical).
        pl.BlockSpec((kwcin, wcout), lambda i: (0, 0)),
        pl.BlockSpec((1, wcout), lambda i: (0, 0)),
    ]
    if add_res:
        inputs.append(residual)
        in_specs.append(pl.BlockSpec((Mt, wcout), lambda i: (i, 0)))
    if with_proj:
        inputs += [proj_scale, proj_w.astype(jnp.bfloat16), proj_bias]
        in_specs += [pl.BlockSpec((1, wcin), lambda i: (0, 0)),
                     pl.BlockSpec((wcin, wcout), lambda i: (0, 0)),
                     pl.BlockSpec((1, wcout), lambda i: (0, 0))]

    out_shape = [jax.ShapeDtypeStruct((M, wcout), out_dtype)]
    out_specs = [pl.BlockSpec((Mt, wcout), lambda i: (i, 0))]
    if with_proj:
        out_shape.append(jax.ShapeDtypeStruct((M, wcout), jnp.bfloat16))
        out_specs.append(pl.BlockSpec((Mt, wcout), lambda i: (i, 0)))
    if emit_stats:
        out_shape.append(jax.ShapeDtypeStruct((G, 2, wcout), jnp.float32))
        out_specs.append(pl.BlockSpec((1, 2, wcout), lambda i: (i, 0, 0)))

    kernel = functools.partial(_conv_block_kernel, relu=relu, add_res=add_res,
                               with_proj=with_proj, emit_stats=emit_stats,
                               H=H, KH=KH)

    flops = 2 * M * kwcin * wcout + (2 * M * wcin * wcout if with_proj else 0)
    bytes_accessed = sum(int(a.size) * a.dtype.itemsize for a in inputs)
    bytes_accessed += sum(int(s.size) * jnp.dtype(s.dtype).itemsize
                          for s in out_shape)

    outs = pl.pallas_call(
        kernel,
        grid=(G,),
        out_shape=tuple(out_shape),
        in_specs=in_specs,
        out_specs=tuple(out_specs),
        scratch_shapes=[pltpu.VMEM((Mt + 2 * ph, wcin), jnp.float32)],
        compiler_params=pltpu.CompilerParams(
            dimension_semantics=("parallel",),
            vmem_limit_bytes=32 * 1024 * 1024),
        cost_estimate=pl.CostEstimate(flops=flops, transcendentals=0,
                                      bytes_accessed=bytes_accessed),
    )(*inputs)

    outs = list(outs) if isinstance(outs, (tuple, list)) else [outs]
    out = outs.pop(0)
    proj = outs.pop(0) if with_proj else None
    stats = outs.pop(0) if emit_stats else None
    return out, proj, stats


# --------------------------------------------------------------------------
# Wrapper-side helpers (tiny XLA ops)
# --------------------------------------------------------------------------
def _banded_weight(w, W):
    """(KH, KW, Cin, Cout) conv weight -> (KH*W*Cin, W*Cout) banded matrix.

    band[ky*W*Cin + xin*Cin + ci, xout*Cout + co] = w[ky, xin-xout+pw, ci, co]
    (zero where kx falls outside the kernel -> built-in zero x-padding)."""
    KH, KW, Cin, Cout = w.shape
    pw = KW // 2
    xin = jnp.arange(W)[:, None]
    xout = jnp.arange(W)[None, :]
    kx = xin - xout + pw
    valid = (kx >= 0) & (kx < KW)
    kx_c = jnp.clip(kx, 0, KW - 1)
    blocks = w[:, kx_c, :, :]                              # (KH, W, W, Cin, Cout)
    blocks = blocks * valid[None, :, :, None, None].astype(w.dtype)
    return blocks.transpose(0, 1, 3, 2, 4).reshape(KH * W * Cin, W * Cout)


def _bn_affine(gamma, beta, mu, var, W, c_pad=None):
    """Per-channel BN scale/shift -> per-lane (1, W*C) rows (zero-padded Cin)."""
    scale = gamma * jax.lax.rsqrt(var + EPS)
    shift = beta - mu * scale
    if c_pad is not None and c_pad > scale.shape[0]:
        z = jnp.zeros((c_pad - scale.shape[0],), scale.dtype)
        scale = jnp.concatenate([scale, z])
        shift = jnp.concatenate([shift, z])
    return jnp.tile(scale, W)[None, :], jnp.tile(shift, W)[None, :]


def _pad_cin(cin, W, lanes=LANES):
    """Smallest c >= cin with (W*c) % lanes == 0 (lane-dense first layer)."""
    c = cin
    while (W * c) % lanes and c < 2 * cin + 8:
        c += 1
    return c if (W * c) % lanes == 0 else cin


# --------------------------------------------------------------------------
# resdown forward
# --------------------------------------------------------------------------
@jax.jit
def resdown_forward(x_nchw, p):
    """resdown.forward: x = proj(x) + conv1(conv0(x)); x = x + conv3(conv2(x))."""
    N, Cin, H, W = x_nchw.shape
    Cout = p['c0_bias'].shape[0]
    count = N * H * W                      # BN reduction count per channel

    # NCHW -> lane-dense fused rows (N*H, W*C); zero-pad Cin so the first
    # layer's lane dim is a multiple of 128.
    x_nhwc = jnp.transpose(x_nchw, (0, 2, 3, 1))
    cin_p = _pad_cin(Cin, W)
    x_pad = jnp.pad(x_nhwc, ((0, 0), (0, 0), (0, 0), (0, cin_p - Cin)))
    x_rows = x_pad.reshape(N * H, W * cin_p)

    def tile_out(v):                       # per-channel -> per-lane (1, W*Cout)
        return jnp.tile(v, W)[None, :]

    def pad_w_cin(w):                      # pad a conv weight's Cin to cin_p
        return jnp.pad(w, ((0, 0), (0, 0), (0, cin_p - Cin), (0, 0)))

    def finish_stats(stats):               # fold fused per-lane partial sums
        s = jnp.sum(stats, axis=0).reshape(2, W, Cout).sum(axis=1)
        mu = s[0] / count
        var = jnp.maximum(s[1] / count - mu * mu, 0.0)
        return mu, var

    # batch stats of the input (needed before the first kernel can run)
    mu_x = jnp.mean(x_nhwc, axis=(0, 1, 2))
    var_x = jnp.mean(jnp.square(x_nhwc - mu_x), axis=(0, 1, 2))

    # proj = BN -> 1x1 conv (no ReLU): scale applied in-kernel, shift folded
    # into the bias; fused into the first conv kernel (single HBM read of x).
    scale_p = p['proj_g'] * jax.lax.rsqrt(var_x + EPS)
    shift_p = p['proj_b'] - mu_x * scale_p
    wp = p['proj_w'][0, 0]                                  # (Cin, Cout)
    scale_p_pad = jnp.concatenate(
        [scale_p, jnp.zeros((cin_p - Cin,), scale_p.dtype)])
    pscale = jnp.tile(scale_p_pad, W)[None, :]
    wp_pad = jnp.pad(wp, ((0, cin_p - Cin), (0, 0)))
    wproj = _banded_weight(wp_pad[None, None], W)           # (W*cin_p, W*Cout)
    pbias = tile_out(p['proj_bias'] + shift_p @ wp)

    # conv_0 (+ fused proj branch), fused partial stats of t0
    s0, sh0 = _bn_affine(p['c0_g'], p['c0_b'], mu_x, var_x, W, c_pad=cin_p)
    t0, proj, st0 = conv_block(
        x_rows, s0, sh0, _banded_weight(pad_w_cin(p['c0_w']), W),
        tile_out(p['c0_bias']), H=H,
        proj_scale=pscale, proj_w=wproj, proj_bias=pbias,
        relu=True, out_dtype=jnp.bfloat16, emit_stats=True)
    mu0, var0 = finish_stats(st0)

    # conv_1 (residual = proj), fused partial stats of s1 = proj + conv_1(.)
    sc1, sh1 = _bn_affine(p['c1_g'], p['c1_b'], mu0, var0, W)
    s1, _, st1 = conv_block(
        t0, sc1, sh1, _banded_weight(p['c1_w'], W), tile_out(p['c1_bias']),
        H=H, residual=proj, relu=True, out_dtype=jnp.bfloat16, emit_stats=True)
    mu1, var1 = finish_stats(st1)

    # conv_2, fused partial stats of t2
    sc2, sh2 = _bn_affine(p['c2_g'], p['c2_b'], mu1, var1, W)
    t2, _, st2 = conv_block(
        s1, sc2, sh2, _banded_weight(p['c2_w'], W), tile_out(p['c2_bias']),
        H=H, relu=True, out_dtype=jnp.bfloat16, emit_stats=True)
    mu2, var2 = finish_stats(st2)

    # conv_3 (residual = s1), final output in f32
    sc3, sh3 = _bn_affine(p['c3_g'], p['c3_b'], mu2, var2, W)
    out_rows, _, _ = conv_block(
        t2, sc3, sh3, _banded_weight(p['c3_w'], W), tile_out(p['c3_bias']),
        H=H, residual=s1, relu=True, out_dtype=jnp.float32, emit_stats=False)

    # fused layout -> NCHW
    return jnp.transpose(out_rows.reshape(N, H, W, Cout), (0, 3, 1, 2))


# --------------------------------------------------------------------------
# Parameters and pure-JAX reference (for a sanity check)
# --------------------------------------------------------------------------
def init_resdown_params(key, in_channels, out_channels, sz):
    """Deterministic synthetic parameters (PyTorch-default-style init)."""
    def conv_init(k, kh, kw, cin, cout):
        k_w, k_b = jax.random.split(k)
        bound = 1.0 / float(jnp.sqrt(float(cin * kh * kw)))
        w = jax.random.uniform(k_w, (kh, kw, cin, cout), jnp.float32,
                               -bound, bound)
        b = jax.random.uniform(k_b, (cout,), jnp.float32, -bound, bound)
        return w, b

    keys = jax.random.split(key, 5)
    p = {}
    p['proj_g'] = jnp.ones((in_channels,), jnp.float32)
    p['proj_b'] = jnp.zeros((in_channels,), jnp.float32)
    p['proj_w'], p['proj_bias'] = conv_init(keys[0], 1, 1,
                                            in_channels, out_channels)
    cins = [in_channels, out_channels, out_channels, out_channels]
    for t in range(4):
        cin = cins[t]
        p[f'c{t}_g'] = jnp.ones((cin,), jnp.float32)
        p[f'c{t}_b'] = jnp.zeros((cin,), jnp.float32)
        p[f'c{t}_w'], p[f'c{t}_bias'] = conv_init(keys[t + 1], sz, sz,
                                                  cin, out_channels)
    return p


def _reference_forward(x_nchw, p):
    """Pure-JAX reference mirroring the kernels' precision structure
    (bf16 matmul inputs/weights, f32 accumulation, bf16 intermediates)."""
    x = jnp.transpose(x_nchw, (0, 2, 3, 1))  # NHWC

    def bn(a, g, b):
        mu = jnp.mean(a, axis=(0, 1, 2))
        var = jnp.mean(jnp.square(a - mu), axis=(0, 1, 2))
        return (a - mu) * (g * jax.lax.rsqrt(var + EPS)) + b

    def conv(a, w, bias):
        KH, KW = w.shape[0], w.shape[1]
        ph, pw = KH // 2, KW // 2
        H, W = a.shape[1], a.shape[2]
        a16 = a.astype(jnp.bfloat16).astype(jnp.float32)
        w16 = w.astype(jnp.bfloat16).astype(jnp.float32)
        ap = jnp.pad(a16, ((0, 0), (ph, ph), (pw, pw), (0, 0)))
        out = jnp.zeros(a.shape[:3] + (w.shape[3],), jnp.float32)
        for ky in range(KH):
            for kx in range(KW):
                out = out + jnp.einsum('nhwc,cd->nhwd',
                                       ap[:, ky:ky + H, kx:kx + W, :],
                                       w16[ky, kx])
        return out + bias

    def q(a):  # bf16 storage rounding of intermediates (as in the kernels)
        return a.astype(jnp.bfloat16).astype(jnp.float32)

    proj = q(conv(bn(x, p['proj_g'], p['proj_b']), p['proj_w'], p['proj_bias']))
    t0 = q(conv(jax.nn.relu(bn(x, p['c0_g'], p['c0_b'])),
                p['c0_w'], p['c0_bias']))
    s1 = q(proj + conv(jax.nn.relu(bn(t0, p['c1_g'], p['c1_b'])),
                       p['c1_w'], p['c1_bias']))
    t2 = q(conv(jax.nn.relu(bn(s1, p['c2_g'], p['c2_b'])),
                p['c2_w'], p['c2_bias']))
    out = s1 + conv(jax.nn.relu(bn(t2, p['c3_g'], p['c3_b'])),
                    p['c3_w'], p['c3_bias'])
    return jnp.transpose(out, (0, 3, 1, 2))


if __name__ == "__main__":
    key = jax.random.PRNGKey(0)
    k_x, k_p = jax.random.split(key)

    N, Cin, H, W = 2, 4, 16, 16   # NCHW input (PyTorch convention)
    Cout, sz = 8, 3

    x = jax.random.normal(k_x, (N, Cin, H, W), jnp.float32)
    params = init_resdown_params(k_p, Cin, Cout, sz)

    y = jax.block_until_ready(resdown_forward(x, params))

    assert y.shape == (N, Cout, H, W), y.shape
    assert bool(jnp.all(jnp.isfinite(y)))

    # Sanity check against a pure-JAX reference (bf16 rounding tolerance).
    y_ref = _reference_forward(x, params)
    max_err = float(jnp.max(jnp.abs(y - y_ref)))
    assert max_err < 0.1, max_err

    print("KERNEL_OK")
</pallas_src>

<mosaic_0001>
module attributes {stable_mosaic.version = 11 : i64} {
  func.func @_conv_block_kernel(%arg0: i32, %arg1: memref<32x128xf32, #tpu.memory_space<vmem>>, %arg2: memref<1x128xf32, #tpu.memory_space<vmem>>, %arg3: memref<1x128xf32, #tpu.memory_space<vmem>>, %arg4: memref<384x128xbf16, #tpu.memory_space<vmem>>, %arg5: memref<1x128xf32, #tpu.memory_space<vmem>>, %arg6: memref<1x128xf32, #tpu.memory_space<vmem>>, %arg7: memref<128x128xbf16, #tpu.memory_space<vmem>>, %arg8: memref<1x128xf32, #tpu.memory_space<vmem>>, %arg9: memref<32x128xbf16, #tpu.memory_space<vmem>>, %arg10: memref<32x128xbf16, #tpu.memory_space<vmem>>, %arg11: memref<1x2x128xf32, #tpu.memory_space<vmem>>, %arg12: memref<34x128xf32, #tpu.memory_space<vmem>>) attributes {dimension_semantics = [#tpu.dimension_semantics<parallel>], iteration_bounds = array<i64: 1>, scalar_prefetch = 0 : i64, scratch_operands = 1 : i64, tpu.core_type = #tpu.core_type<tc>, window_params = [{transform_indices = @transform_0, window_bounds = array<i64: 32, 128>}, {pipeline_mode = #tpu.pipeline_mode<synchronous>, transform_indices = @transform_1, window_bounds = array<i64: 1, 128>}, {pipeline_mode = #tpu.pipeline_mode<synchronous>, transform_indices = @transform_2, window_bounds = array<i64: 1, 128>}, {pipeline_mode = #tpu.pipeline_mode<synchronous>, transform_indices = @transform_3, window_bounds = array<i64: 384, 128>}, {pipeline_mode = #tpu.pipeline_mode<synchronous>, transform_indices = @transform_4, window_bounds = array<i64: 1, 128>}, {pipeline_mode = #tpu.pipeline_mode<synchronous>, transform_indices = @transform_5, window_bounds = array<i64: 1, 128>}, {pipeline_mode = #tpu.pipeline_mode<synchronous>, transform_indices = @transform_6, window_bounds = array<i64: 128, 128>}, {pipeline_mode = #tpu.pipeline_mode<synchronous>, transform_indices = @transform_7, window_bounds = array<i64: 1, 128>}, {transform_indices = @transform_8, window_bounds = array<i64: 32, 128>}, {transform_indices = @transform_9, window_bounds = array<i64: 32, 128>}, {transform_indices = @transform_10, window_bounds = array<i64: 1, 2, 128>}]} {
    %c0 = arith.constant 0 : index
    %c0_0 = arith.constant 0 : index
    %0 = vector.load %arg1[%c0, %c0_0] : memref<32x128xf32, #tpu.memory_space<vmem>>, vector<32x128xf32>
    %c0_1 = arith.constant 0 : index
    %c0_2 = arith.constant 0 : index
    %1 = vector.load %arg2[%c0_1, %c0_2] : memref<1x128xf32, #tpu.memory_space<vmem>>, vector<1x128xf32>
    %2 = vector.broadcast %1 : vector<1x128xf32> to vector<32x128xf32>
    %3 = arith.mulf %0, %2 : vector<32x128xf32>
    %c0_3 = arith.constant 0 : index
    %c0_4 = arith.constant 0 : index
    %4 = vector.load %arg3[%c0_3, %c0_4] : memref<1x128xf32, #tpu.memory_space<vmem>>, vector<1x128xf32>
    %5 = vector.broadcast %4 : vector<1x128xf32> to vector<32x128xf32>
    %6 = arith.addf %3, %5 : vector<32x128xf32>
    %cst = arith.constant 0.000000e+00 : f32
    %7 = vector.broadcast %cst : f32 to vector<32x128xf32>
    %8 = arith.maximumf %6, %7 : vector<32x128xf32>
    %c1 = arith.constant 1 : index
    %c0_5 = arith.constant 0 : index
    %9 = vector.load %arg12[%c1, %c0_5] : memref<34x128xf32, #tpu.memory_space<vmem>>, vector<32x128xf32>
    tpu.vector_store %arg12[%c1, %c0_5], %8 {strides = array<i32>} : memref<34x128xf32, #tpu.memory_space<vmem>>, vector<32x128xf32>,
    %10 = tpu.iota {dimensions = array<i32: 0>} : vector<32x1xi32>
    %c16_i32 = arith.constant 16 : i32
    %c0_i32 = arith.constant 0 : i32
    %11 = arith.cmpi eq, %c16_i32, %c0_i32 : i32
    %c1_i32 = arith.constant 1 : i32
    %12 = arith.select %11, %c1_i32, %c16_i32 : i32
    %13 = vector.broadcast %12 : i32 to vector<32x1xi32>
    %14 = arith.remsi %10, %13 : vector<32x1xi32>
    %c0_i32_6 = arith.constant 0 : i32
    %15 = vector.broadcast %c0_i32_6 : i32 to vector<32x1xi32>
    %16 = arith.cmpi ne, %14, %15 : vector<32x1xi32>
    %c0_i32_7 = arith.constant 0 : i32
    %17 = vector.broadcast %c0_i32_7 : i32 to vector<32x1xi32>
    %18 = arith.cmpi slt, %14, %17 : vector<32x1xi32>
    %c0_i32_8 = arith.constant 0 : i32
    %19 = arith.cmpi slt, %12, %c0_i32_8 : i32
    %20 = vector.broadcast %19 : i1 to vector<32x1xi1>
    %21 = vector.broadcast %20 : vector<32x1xi1> to vector<32x1xi1>
    %22 = arith.xori %18, %21 : vector<32x1xi1>
    %23 = arith.andi %22, %16 : vector<32x1xi1>
    %24 = vector.broadcast %12 : i32 to vector<32x1xi32>
    %25 = arith.addi %14, %24 : vector<32x1xi32>
    %26 = arith.select %23, %25, %14 : vector<32x1xi1>, vector<32x1xi32>
    %c0_9 = arith.constant 0 : index
    %c0_10 = arith.constant 0 : index
    %27 = vector.load %arg12[%c0_9, %c0_10] : memref<34x128xf32, #tpu.memory_space<vmem>>, vector<32x128xf32>
    %c-1_i32 = arith.constant -1 : i32
    %28 = vector.broadcast %c-1_i32 : i32 to vector<32x1xi32>
    %29 = arith.addi %26, %28 : vector<32x1xi32>
    %c0_i32_11 = arith.constant 0 : i32
    %30 = vector.broadcast %c0_i32_11 : i32 to vector<32x1xi32>
    %31 = arith.cmpi sge, %29, %30 : vector<32x1xi32>
    %c-1_i32_12 = arith.constant -1 : i32
    %32 = vector.broadcast %c-1_i32_12 : i32 to vector<32x1xi32>
    %33 = arith.addi %26, %32 : vector<32x1xi32>
    %c16_i32_13 = arith.constant 16 : i32
    %34 = vector.broadcast %c16_i32_13 : i32 to vector<32x1xi32>
    %35 = arith.cmpi slt, %33, %34 : vector<32x1xi32>
    %36 = arith.andi %31, %35 : vector<32x1xi1>
    %cst_14 = arith.constant 0.000000e+00 : f32
    %37 = vector.shape_cast %36 : vector<32x1xi1> to vector<32x1xi1>
    %38 = vector.broadcast %37 : vector<32x1xi1> to vector<32x128xi1>
    %39 = vector.broadcast %cst_14 : f32 to vector<32x128xf32>
    %40 = arith.select %38, %27, %39 : vector<32x128xi1>, vector<32x128xf32>
    %c1_15 = arith.constant 1 : index
    %c0_16 = arith.constant 0 : index
    %41 = vector.load %arg12[%c1_15, %c0_16] : memref<34x128xf32, #tpu.memory_space<vmem>>, vector<32x128xf32>
    %c2 = arith.constant 2 : index
    %c0_17 = arith.constant 0 : index
    %42 = vector.load %arg12[%c2, %c0_17] : memref<34x128xf32, #tpu.memory_space<vmem>>, vector<32x128xf32>
    %c1_i32_18 = arith.constant 1 : i32
    %43 = vector.broadcast %c1_i32_18 : i32 to vector<32x1xi32>
    %44 = arith.addi %26, %43 : vector<32x1xi32>
    %c0_i32_19 = arith.constant 0 : i32
    %45 = vector.broadcast %c0_i32_19 : i32 to vector<32x1xi32>
    %46 = arith.cmpi sge, %44, %45 : vector<32x1xi32>
    %c1_i32_20 = arith.constant 1 : i32
    %47 = vector.broadcast %c1_i32_20 : i32 to vector<32x1xi32>
    %48 = arith.addi %26, %47 : vector<32x1xi32>
    %c16_i32_21 = arith.constant 16 : i32
    %49 = vector.broadcast %c16_i32_21 : i32 to vector<32x1xi32>
    %50 = arith.cmpi slt, %48, %49 : vector<32x1xi32>
    %51 = arith.andi %46, %50 : vector<32x1xi1>
    %cst_22 = arith.constant 0.000000e+00 : f32
    %52 = vector.shape_cast %51 : vector<32x1xi1> to vector<32x1xi1>
    %53 = vector.broadcast %52 : vector<32x1xi1> to vector<32x128xi1>
    %54 = vector.broadcast %cst_22 : f32 to vector<32x128xf32>
    %55 = arith.select %53, %42, %54 : vector<32x128xi1>, vector<32x128xf32>
    %56 = tpu.concatenate %40, %41, %55 in 1 : vector<32x128xf32>, vector<32x128xf32>, vector<32x128xf32> -> vector<32x384xf32>
    %57 = arith.truncf %56 : vector<32x384xf32> to vector<32x384xbf16>
    %c0_23 = arith.constant 0 : index
    %c0_24 = arith.constant 0 : index
    %58 = vector.load %arg4[%c0_23, %c0_24] : memref<384x128xbf16, #tpu.memory_space<vmem>>, vector<384x128xbf16>
    %cst_25 = arith.constant dense<0.000000e+00> : vector<32x128xf32>
    %59 = tpu.matmul %57, %58, %cst_25 {dimension_numbers = #tpu.dot_dimension_numbers<[1], [0], [0], [1], [0, 0, 1, 1], [], []>} : vector<32x384xbf16>, vector<384x128xbf16>, vector<32x128xf32> -> vector<32x128xf32>
    %c0_26 = arith.constant 0 : index
    %c0_27 = arith.constant 0 : index
    %60 = vector.load %arg5[%c0_26, %c0_27] : memref<1x128xf32, #tpu.memory_space<vmem>>, vector<1x128xf32>
    %61 = vector.broadcast %60 : vector<1x128xf32> to vector<32x128xf32>
    %62 = arith.addf %59, %61 : vector<32x128xf32>
    %63 = arith.truncf %62 : vector<32x128xf32> to vector<32x128xbf16>
    %c0_28 = arith.constant 0 : index
    %c0_29 = arith.constant 0 : index
    %64 = vector.load %arg9[%c0_28, %c0_29] : memref<32x128xbf16, #tpu.memory_space<vmem>>, vector<32x128xbf16>
    tpu.vector_store %arg9[%c0_28, %c0_29], %63 {strides = array<i32>} : memref<32x128xbf16, #tpu.memory_space<vmem>>, vector<32x128xbf16>,
    %cst_30 = arith.constant dense<0.000000e+00> : vector<128xf32>
    %65 = vector.multi_reduction <add>, %62, %cst_30 [0] : vector<32x128xf32> to vector<128xf32>
    %66 = vector.shape_cast %65 : vector<128xf32> to vector<1x128xf32>
    %c0_31 = arith.constant 0 : index
    %c0_32 = arith.constant 0 : index
    %c0_33 = arith.constant 0 : index
    %67 = vector.load %arg11[%c0_31, %c0_32, %c0_33] : memref<1x2x128xf32, #tpu.memory_space<vmem>>, vector<1x1x128xf32>
    %68 = vector.shape_cast %67 : vector<1x1x128xf32> to vector<1x128xf32>
    %69 = vector.shape_cast %66 : vector<1x128xf32> to vector<1x1x128xf32>
    tpu.vector_store %arg11[%c0_31, %c0_32, %c0_33], %69 {strides = array<i32>} : memref<1x2x128xf32, #tpu.memory_space<vmem>>, vector<1x1x128xf32>,
    %70 = arith.mulf %62, %62 : vector<32x128xf32>
    %cst_34 = arith.constant dense<0.000000e+00> : vector<128xf32>
    %71 = vector.multi_reduction <add>, %70, %cst_34 [0] : vector<32x128xf32> to vector<128xf32>
    %72 = vector.shape_cast %71 : vector<128xf32> to vector<1x128xf32>
    %c0_35 = arith.constant 0 : index
    %c1_36 = arith.constant 1 : index
    %c0_37 = arith.constant 0 : index
    %73 = vector.load %arg11[%c0_35, %c1_36, %c0_37] : memref<1x2x128xf32, #tpu.memory_space<vmem>>, vector<1x1x128xf32>
    %74 = vector.shape_cast %73 : vector<1x1x128xf32> to vector<1x128xf32>
    %75 = vector.shape_cast %72 : vector<1x128xf32> to vector<1x1x128xf32>
    tpu.vector_store %arg11[%c0_35, %c1_36, %c0_37], %75 {strides = array<i32>} : memref<1x2x128xf32, #tpu.memory_space<vmem>>, vector<1x1x128xf32>,
    %c0_38 = arith.constant 0 : index
    %c0_39 = arith.constant 0 : index
    %76 = vector.load %arg6[%c0_38, %c0_39] : memref<1x128xf32, #tpu.memory_space<vmem>>, vector<1x128xf32>
    %77 = vector.broadcast %76 : vector<1x128xf32> to vector<32x128xf32>
    %78 = arith.mulf %0, %77 : vector<32x128xf32>
    %79 = arith.truncf %78 : vector<32x128xf32> to vector<32x128xbf16>
    %c0_40 = arith.constant 0 : index
    %c0_41 = arith.constant 0 : index
    %80 = vector.load %arg7[%c0_40, %c0_41] : memref<128x128xbf16, #tpu.memory_space<vmem>>, vector<128x128xbf16>
    %cst_42 = arith.constant dense<0.000000e+00> : vector<32x128xf32>
    %81 = tpu.matmul %79, %80, %cst_42 {dimension_numbers = #tpu.dot_dimension_numbers<[1], [0], [0], [1], [0, 0, 1, 1], [], []>} : vector<32x128xbf16>, vector<128x128xbf16>, vector<32x128xf32> -> vector<32x128xf32>
    %c0_43 = arith.constant 0 : index
    %c0_44 = arith.constant 0 : index
    %82 = vector.load %arg8[%c0_43, %c0_44] : memref<1x128xf32, #tpu.memory_space<vmem>>, vector<1x128xf32>
    %83 = vector.broadcast %82 : vector<1x128xf32> to vector<32x128xf32>
    %84 = arith.addf %81, %83 : vector<32x128xf32>
    %85 = arith.truncf %84 : vector<32x128xf32> to vector<32x128xbf16>
    %c0_45 = arith.constant 0 : index
    %c0_46 = arith.constant 0 : index
    %86 = vector.load %arg10[%c0_45, %c0_46] : memref<32x128xbf16, #tpu.memory_space<vmem>>, vector<32x128xbf16>
    tpu.vector_store %arg10[%c0_45, %c0_46], %85 {strides = array<i32>} : memref<32x128xbf16, #tpu.memory_space<vmem>>, vector<32x128xbf16>,
    return
  }
  func.func @transform_0(%arg0: i32) -> (i32, i32) {
    %c0_i32 = arith.constant 0 : i32
    %c0_i32_0 = arith.constant 0 : i32
    return %arg0, %c0_i32 : i32, i32
  }
  func.func @transform_1(%arg0: i32) -> (i32, i32) {
    %c0_i32 = arith.constant 0 : i32
    %c0_i32_0 = arith.constant 0 : i32
    %c0_i32_1 = arith.constant 0 : i32
    return %c0_i32, %c0_i32_0 : i32, i32
  }
  func.func @transform_2(%arg0: i32) -> (i32, i32) {
    %c0_i32 = arith.constant 0 : i32
    %c0_i32_0 = arith.constant 0 : i32
    %c0_i32_1 = arith.constant 0 : i32
    return %c0_i32, %c0_i32_0 : i32, i32
  }
  func.func @transform_3(%arg0: i32) -> (i32, i32) {
    %c0_i32 = arith.constant 0 : i32
    %c0_i32_0 = arith.constant 0 : i32
    %c0_i32_1 = arith.constant 0 : i32
    return %c0_i32, %c0_i32_0 : i32, i32
  }
  func.func @transform_4(%arg0: i32) -> (i32, i32) {
    %c0_i32 = arith.constant 0 : i32
    %c0_i32_0 = arith.constant 0 : i32
    %c0_i32_1 = arith.constant 0 : i32
    return %c0_i32, %c0_i32_0 : i32, i32
  }
  func.func @transform_5(%arg0: i32) -> (i32, i32) {
    %c0_i32 = arith.constant 0 : i32
    %c0_i32_0 = arith.constant 0 : i32
    %c0_i32_1 = arith.constant 0 : i32
    return %c0_i32, %c0_i32_0 : i32, i32
  }
  func.func @transform_6(%arg0: i32) -> (i32, i32) {
    %c0_i32 = arith.constant 0 : i32
    %c0_i32_0 = arith.constant 0 : i32
    %c0_i32_1 = arith.constant 0 : i32
    return %c0_i32, %c0_i32_0 : i32, i32
  }
  func.func @transform_7(%arg0: i32) -> (i32, i32) {
    %c0_i32 = arith.constant 0 : i32
    %c0_i32_0 = arith.constant 0 : i32
    %c0_i32_1 = arith.constant 0 : i32
    return %c0_i32, %c0_i32_0 : i32, i32
  }
  func.func @transform_8(%arg0: i32) -> (i32, i32) {
    %c0_i32 = arith.constant 0 : i32
    %c0_i32_0 = arith.constant 0 : i32
    return %arg0, %c0_i32 : i32, i32
  }
  func.func @transform_9(%arg0: i32) -> (i32, i32) {
    %c0_i32 = arith.constant 0 : i32
    %c0_i32_0 = arith.constant 0 : i32
    return %arg0, %c0_i32 : i32, i32
  }
  func.func @transform_10(%arg0: i32) -> (i32, i32, i32) {
    %c0_i32 = arith.constant 0 : i32
    %c0_i32_0 = arith.constant 0 : i32
    %c0_i32_1 = arith.constant 0 : i32
    return %arg0, %c0_i32, %c0_i32_0 : i32, i32, i32
  }
}

module attributes {stable_mosaic.version = 11 : i64} {
  func.func @_conv_block_kernel(%arg0: i32, %arg1: memref<32x128xbf16, #tpu.memory_space<vmem>>, %arg2: memref<1x128xf32, #tpu.memory_space<vmem>>, %arg3: memref<1x128xf32, #tpu.memory_space<vmem>>, %arg4: memref<384x128xbf16, #tpu.memory_space<vmem>>, %arg5: memref<1x128xf32, #tpu.memory_space<vmem>>, %arg6: memref<32x128xbf16, #tpu.memory_space<vmem>>, %arg7: memref<32x128xbf16, #tpu.memory_space<vmem>>, %arg8: memref<1x2x128xf32, #tpu.memory_space<vmem>>, %arg9: memref<34x128xf32, #tpu.memory_space<vmem>>) attributes {dimension_semantics = [#tpu.dimension_semantics<parallel>], iteration_bounds = array<i64: 1>, scalar_prefetch = 0 : i64, scratch_operands = 1 : i64, tpu.core_type = #tpu.core_type<tc>, window_params = [{transform_indices = @transform_0, window_bounds = array<i64: 32, 128>}, {pipeline_mode = #tpu.pipeline_mode<synchronous>, transform_indices = @transform_1, window_bounds = array<i64: 1, 128>}, {pipeline_mode = #tpu.pipeline_mode<synchronous>, transform_indices = @transform_2, window_bounds = array<i64: 1, 128>}, {pipeline_mode = #tpu.pipeline_mode<synchronous>, transform_indices = @transform_3, window_bounds = array<i64: 384, 128>}, {pipeline_mode = #tpu.pipeline_mode<synchronous>, transform_indices = @transform_4, window_bounds = array<i64: 1, 128>}, {transform_indices = @transform_5, window_bounds = array<i64: 32, 128>}, {transform_indices = @transform_6, window_bounds = array<i64: 32, 128>}, {transform_indices = @transform_7, window_bounds = array<i64: 1, 2, 128>}]} {
    %c0 = arith.constant 0 : index
    %c0_0 = arith.constant 0 : index
    %0 = vector.load %arg1[%c0, %c0_0] : memref<32x128xbf16, #tpu.memory_space<vmem>>, vector<32x128xbf16>
    %1 = arith.extf %0 : vector<32x128xbf16> to vector<32x128xf32>
    %c0_1 = arith.constant 0 : index
    %c0_2 = arith.constant 0 : index
    %2 = vector.load %arg2[%c0_1, %c0_2] : memref<1x128xf32, #tpu.memory_space<vmem>>, vector<1x128xf32>
    %3 = vector.broadcast %2 : vector<1x128xf32> to vector<32x128xf32>
    %4 = arith.mulf %1, %3 : vector<32x128xf32>
    %c0_3 = arith.constant 0 : index
    %c0_4 = arith.constant 0 : index
    %5 = vector.load %arg3[%c0_3, %c0_4] : memref<1x128xf32, #tpu.memory_space<vmem>>, vector<1x128xf32>
    %6 = vector.broadcast %5 : vector<1x128xf32> to vector<32x128xf32>
    %7 = arith.addf %4, %6 : vector<32x128xf32>
    %cst = arith.constant 0.000000e+00 : f32
    %8 = vector.broadcast %cst : f32 to vector<32x128xf32>
    %9 = arith.maximumf %7, %8 : vector<32x128xf32>
    %c1 = arith.constant 1 : index
    %c0_5 = arith.constant 0 : index
    %10 = vector.load %arg9[%c1, %c0_5] : memref<34x128xf32, #tpu.memory_space<vmem>>, vector<32x128xf32>
    tpu.vector_store %arg9[%c1, %c0_5], %9 {strides = array<i32>} : memref<34x128xf32, #tpu.memory_space<vmem>>, vector<32x128xf32>,
    %11 = tpu.iota {dimensions = array<i32: 0>} : vector<32x1xi32>
    %c16_i32 = arith.constant 16 : i32
    %c0_i32 = arith.constant 0 : i32
    %12 = arith.cmpi eq, %c16_i32, %c0_i32 : i32
    %c1_i32 = arith.constant 1 : i32
    %13 = arith.select %12, %c1_i32, %c16_i32 : i32
    %14 = vector.broadcast %13 : i32 to vector<32x1xi32>
    %15 = arith.remsi %11, %14 : vector<32x1xi32>
    %c0_i32_6 = arith.constant 0 : i32
    %16 = vector.broadcast %c0_i32_6 : i32 to vector<32x1xi32>
    %17 = arith.cmpi ne, %15, %16 : vector<32x1xi32>
    %c0_i32_7 = arith.constant 0 : i32
    %18 = vector.broadcast %c0_i32_7 : i32 to vector<32x1xi32>
    %19 = arith.cmpi slt, %15, %18 : vector<32x1xi32>
    %c0_i32_8 = arith.constant 0 : i32
    %20 = arith.cmpi slt, %13, %c0_i32_8 : i32
    %21 = vector.broadcast %20 : i1 to vector<32x1xi1>
    %22 = vector.broadcast %21 : vector<32x1xi1> to vector<32x1xi1>
    %23 = arith.xori %19, %22 : vector<32x1xi1>
    %24 = arith.andi %23, %17 : vector<32x1xi1>
    %25 = vector.broadcast %13 : i32 to vector<32x1xi32>
    %26 = arith.addi %15, %25 : vector<32x1xi32>
    %27 = arith.select %24, %26, %15 : vector<32x1xi1>, vector<32x1xi32>
    %c0_9 = arith.constant 0 : index
    %c0_10 = arith.constant 0 : index
    %28 = vector.load %arg9[%c0_9, %c0_10] : memref<34x128xf32, #tpu.memory_space<vmem>>, vector<32x128xf32>
    %c-1_i32 = arith.constant -1 : i32
    %29 = vector.broadcast %c-1_i32 : i32 to vector<32x1xi32>
    %30 = arith.addi %27, %29 : vector<32x1xi32>
    %c0_i32_11 = arith.constant 0 : i32
    %31 = vector.broadcast %c0_i32_11 : i32 to vector<32x1xi32>
    %32 = arith.cmpi sge, %30, %31 : vector<32x1xi32>
    %c-1_i32_12 = arith.constant -1 : i32
    %33 = vector.broadcast %c-1_i32_12 : i32 to vector<32x1xi32>
    %34 = arith.addi %27, %33 : vector<32x1xi32>
    %c16_i32_13 = arith.constant 16 : i32
    %35 = vector.broadcast %c16_i32_13 : i32 to vector<32x1xi32>
    %36 = arith.cmpi slt, %34, %35 : vector<32x1xi32>
    %37 = arith.andi %32, %36 : vector<32x1xi1>
    %cst_14 = arith.constant 0.000000e+00 : f32
    %38 = vector.shape_cast %37 : vector<32x1xi1> to vector<32x1xi1>
    %39 = vector.broadcast %38 : vector<32x1xi1> to vector<32x128xi1>
    %40 = vector.broadcast %cst_14 : f32 to vector<32x128xf32>
    %41 = arith.select %39, %28, %40 : vector<32x128xi1>, vector<32x128xf32>
    %c1_15 = arith.constant 1 : index
    %c0_16 = arith.constant 0 : index
    %42 = vector.load %arg9[%c1_15, %c0_16] : memref<34x128xf32, #tpu.memory_space<vmem>>, vector<32x128xf32>
    %c2 = arith.constant 2 : index
    %c0_17 = arith.constant 0 : index
    %43 = vector.load %arg9[%c2, %c0_17] : memref<34x128xf32, #tpu.memory_space<vmem>>, vector<32x128xf32>
    %c1_i32_18 = arith.constant 1 : i32
    %44 = vector.broadcast %c1_i32_18 : i32 to vector<32x1xi32>
    %45 = arith.addi %27, %44 : vector<32x1xi32>
    %c0_i32_19 = arith.constant 0 : i32
    %46 = vector.broadcast %c0_i32_19 : i32 to vector<32x1xi32>
    %47 = arith.cmpi sge, %45, %46 : vector<32x1xi32>
    %c1_i32_20 = arith.constant 1 : i32
    %48 = vector.broadcast %c1_i32_20 : i32 to vector<32x1xi32>
    %49 = arith.addi %27, %48 : vector<32x1xi32>
    %c16_i32_21 = arith.constant 16 : i32
    %50 = vector.broadcast %c16_i32_21 : i32 to vector<32x1xi32>
    %51 = arith.cmpi slt, %49, %50 : vector<32x1xi32>
    %52 = arith.andi %47, %51 : vector<32x1xi1>
    %cst_22 = arith.constant 0.000000e+00 : f32
    %53 = vector.shape_cast %52 : vector<32x1xi1> to vector<32x1xi1>
    %54 = vector.broadcast %53 : vector<32x1xi1> to vector<32x128xi1>
    %55 = vector.broadcast %cst_22 : f32 to vector<32x128xf32>
    %56 = arith.select %54, %43, %55 : vector<32x128xi1>, vector<32x128xf32>
    %57 = tpu.concatenate %41, %42, %56 in 1 : vector<32x128xf32>, vector<32x128xf32>, vector<32x128xf32> -> vector<32x384xf32>
    %58 = arith.truncf %57 : vector<32x384xf32> to vector<32x384xbf16>
    %c0_23 = arith.constant 0 : index
    %c0_24 = arith.constant 0 : index
    %59 = vector.load %arg4[%c0_23, %c0_24] : memref<384x128xbf16, #tpu.memory_space<vmem>>, vector<384x128xbf16>
    %cst_25 = arith.constant dense<0.000000e+00> : vector<32x128xf32>
    %60 = tpu.matmul %58, %59, %cst_25 {dimension_numbers = #tpu.dot_dimension_numbers<[1], [0], [0], [1], [0, 0, 1, 1], [], []>} : vector<32x384xbf16>, vector<384x128xbf16>, vector<32x128xf32> -> vector<32x128xf32>
    %c0_26 = arith.constant 0 : index
    %c0_27 = arith.constant 0 : index
    %61 = vector.load %arg5[%c0_26, %c0_27] : memref<1x128xf32, #tpu.memory_space<vmem>>, vector<1x128xf32>
    %62 = vector.broadcast %61 : vector<1x128xf32> to vector<32x128xf32>
    %63 = arith.addf %60, %62 : vector<32x128xf32>
    %c0_28 = arith.constant 0 : index
    %c0_29 = arith.constant 0 : index
    %64 = vector.load %arg6[%c0_28, %c0_29] : memref<32x128xbf16, #tpu.memory_space<vmem>>, vector<32x128xbf16>
    %65 = arith.extf %64 : vector<32x128xbf16> to vector<32x128xf32>
    %66 = arith.addf %63, %65 : vector<32x128xf32>
    %67 = arith.truncf %66 : vector<32x128xf32> to vector<32x128xbf16>
    %c0_30 = arith.constant 0 : index
    %c0_31 = arith.constant 0 : index
    %68 = vector.load %arg7[%c0_30, %c0_31] : memref<32x128xbf16, #tpu.memory_space<vmem>>, vector<32x128xbf16>
    tpu.vector_store %arg7[%c0_30, %c0_31], %67 {strides = array<i32>} : memref<32x128xbf16, #tpu.memory_space<vmem>>, vector<32x128xbf16>,
    %cst_32 = arith.constant dense<0.000000e+00> : vector<128xf32>
    %69 = vector.multi_reduction <add>, %66, %cst_32 [0] : vector<32x128xf32> to vector<128xf32>
    %70 = vector.shape_cast %69 : vector<128xf32> to vector<1x128xf32>
    %c0_33 = arith.constant 0 : index
    %c0_34 = arith.constant 0 : index
    %c0_35 = arith.constant 0 : index
    %71 = vector.load %arg8[%c0_33, %c0_34, %c0_35] : memref<1x2x128xf32, #tpu.memory_space<vmem>>, vector<1x1x128xf32>
    %72 = vector.shape_cast %71 : vector<1x1x128xf32> to vector<1x128xf32>
    %73 = vector.shape_cast %70 : vector<1x128xf32> to vector<1x1x128xf32>
    tpu.vector_store %arg8[%c0_33, %c0_34, %c0_35], %73 {strides = array<i32>} : memref<1x2x128xf32, #tpu.memory_space<vmem>>, vector<1x1x128xf32>,
    %74 = arith.mulf %66, %66 : vector<32x128xf32>
    %cst_36 = arith.constant dense<0.000000e+00> : vector<128xf32>
    %75 = vector.multi_reduction <add>, %74, %cst_36 [0] : vector<32x128xf32> to vector<128xf32>
    %76 = vector.shape_cast %75 : vector<128xf32> to vector<1x128xf32>
    %c0_37 = arith.constant 0 : index
    %c1_38 = arith.constant 1 : index
    %c0_39 = arith.constant 0 : index
    %77 = vector.load %arg8[%c0_37, %c1_38, %c0_39] : memref<1x2x128xf32, #tpu.memory_space<vmem>>, vector<1x1x128xf32>
    %78 = vector.shape_cast %77 : vector<1x1x128xf32> to vector<1x128xf32>
    %79 = vector.shape_cast %76 : vector<1x128xf32> to vector<1x1x128xf32>
    tpu.vector_store %arg8[%c0_37, %c1_38, %c0_39], %79 {strides = array<i32>} : memref<1x2x128xf32, #tpu.memory_space<vmem>>, vector<1x1x128xf32>,
    return
  }
  func.func @transform_0(%arg0: i32) -> (i32, i32) {
    %c0_i32 = arith.constant 0 : i32
    %c0_i32_0 = arith.constant 0 : i32
    return %arg0, %c0_i32 : i32, i32
  }
  func.func @transform_1(%arg0: i32) -> (i32, i32) {
    %c0_i32 = arith.constant 0 : i32
    %c0_i32_0 = arith.constant 0 : i32
    %c0_i32_1 = arith.constant 0 : i32
    return %c0_i32, %c0_i32_0 : i32, i32
  }
  func.func @transform_2(%arg0: i32) -> (i32, i32) {
    %c0_i32 = arith.constant 0 : i32
    %c0_i32_0 = arith.constant 0 : i32
    %c0_i32_1 = arith.constant 0 : i32
    return %c0_i32, %c0_i32_0 : i32, i32
  }
  func.func @transform_3(%arg0: i32) -> (i32, i32) {
    %c0_i32 = arith.constant 0 : i32
    %c0_i32_0 = arith.constant 0 : i32
    %c0_i32_1 = arith.constant 0 : i32
    return %c0_i32, %c0_i32_0 : i32, i32
  }
  func.func @transform_4(%arg0: i32) -> (i32, i32) {
    %c0_i32 = arith.constant 0 : i32
    %c0_i32_0 = arith.constant 0 : i32
    %c0_i32_1 = arith.constant 0 : i32
    return %c0_i32, %c0_i32_0 : i32, i32
  }
  func.func @transform_5(%arg0: i32) -> (i32, i32) {
    %c0_i32 = arith.constant 0 : i32
    %c0_i32_0 = arith.constant 0 : i32
    return %arg0, %c0_i32 : i32, i32
  }
  func.func @transform_6(%arg0: i32) -> (i32, i32) {
    %c0_i32 = arith.constant 0 : i32
    %c0_i32_0 = arith.constant 0 : i32
    return %arg0, %c0_i32 : i32, i32
  }
  func.func @transform_7(%arg0: i32) -> (i32, i32, i32) {
    %c0_i32 = arith.constant 0 : i32
    %c0_i32_0 = arith.constant 0 : i32
    %c0_i32_1 = arith.constant 0 : i32
    return %arg0, %c0_i32, %c0_i32_0 : i32, i32, i32
  }
}

module attributes {stable_mosaic.version = 11 : i64} {
  func.func @_conv_block_kernel(%arg0: i32, %arg1: memref<32x128xbf16, #tpu.memory_space<vmem>>, %arg2: memref<1x128xf32, #tpu.memory_space<vmem>>, %arg3: memref<1x128xf32, #tpu.memory_space<vmem>>, %arg4: memref<384x128xbf16, #tpu.memory_space<vmem>>, %arg5: memref<1x128xf32, #tpu.memory_space<vmem>>, %arg6: memref<32x128xbf16, #tpu.memory_space<vmem>>, %arg7: memref<1x2x128xf32, #tpu.memory_space<vmem>>, %arg8: memref<34x128xf32, #tpu.memory_space<vmem>>) attributes {dimension_semantics = [#tpu.dimension_semantics<parallel>], iteration_bounds = array<i64: 1>, scalar_prefetch = 0 : i64, scratch_operands = 1 : i64, tpu.core_type = #tpu.core_type<tc>, window_params = [{transform_indices = @transform_0, window_bounds = array<i64: 32, 128>}, {pipeline_mode = #tpu.pipeline_mode<synchronous>, transform_indices = @transform_1, window_bounds = array<i64: 1, 128>}, {pipeline_mode = #tpu.pipeline_mode<synchronous>, transform_indices = @transform_2, window_bounds = array<i64: 1, 128>}, {pipeline_mode = #tpu.pipeline_mode<synchronous>, transform_indices = @transform_3, window_bounds = array<i64: 384, 128>}, {pipeline_mode = #tpu.pipeline_mode<synchronous>, transform_indices = @transform_4, window_bounds = array<i64: 1, 128>}, {transform_indices = @transform_5, window_bounds = array<i64: 32, 128>}, {transform_indices = @transform_6, window_bounds = array<i64: 1, 2, 128>}]} {
    %c0 = arith.constant 0 : index
    %c0_0 = arith.constant 0 : index
    %0 = vector.load %arg1[%c0, %c0_0] : memref<32x128xbf16, #tpu.memory_space<vmem>>, vector<32x128xbf16>
    %1 = arith.extf %0 : vector<32x128xbf16> to vector<32x128xf32>
    %c0_1 = arith.constant 0 : index
    %c0_2 = arith.constant 0 : index
    %2 = vector.load %arg2[%c0_1, %c0_2] : memref<1x128xf32, #tpu.memory_space<vmem>>, vector<1x128xf32>
    %3 = vector.broadcast %2 : vector<1x128xf32> to vector<32x128xf32>
    %4 = arith.mulf %1, %3 : vector<32x128xf32>
    %c0_3 = arith.constant 0 : index
    %c0_4 = arith.constant 0 : index
    %5 = vector.load %arg3[%c0_3, %c0_4] : memref<1x128xf32, #tpu.memory_space<vmem>>, vector<1x128xf32>
    %6 = vector.broadcast %5 : vector<1x128xf32> to vector<32x128xf32>
    %7 = arith.addf %4, %6 : vector<32x128xf32>
    %cst = arith.constant 0.000000e+00 : f32
    %8 = vector.broadcast %cst : f32 to vector<32x128xf32>
    %9 = arith.maximumf %7, %8 : vector<32x128xf32>
    %c1 = arith.constant 1 : index
    %c0_5 = arith.constant 0 : index
    %10 = vector.load %arg8[%c1, %c0_5] : memref<34x128xf32, #tpu.memory_space<vmem>>, vector<32x128xf32>
    tpu.vector_store %arg8[%c1, %c0_5], %9 {strides = array<i32>} : memref<34x128xf32, #tpu.memory_space<vmem>>, vector<32x128xf32>,
    %11 = tpu.iota {dimensions = array<i32: 0>} : vector<32x1xi32>
    %c16_i32 = arith.constant 16 : i32
    %c0_i32 = arith.constant 0 : i32
    %12 = arith.cmpi eq, %c16_i32, %c0_i32 : i32
    %c1_i32 = arith.constant 1 : i32
    %13 = arith.select %12, %c1_i32, %c16_i32 : i32
    %14 = vector.broadcast %13 : i32 to vector<32x1xi32>
    %15 = arith.remsi %11, %14 : vector<32x1xi32>
    %c0_i32_6 = arith.constant 0 : i32
    %16 = vector.broadcast %c0_i32_6 : i32 to vector<32x1xi32>
    %17 = arith.cmpi ne, %15, %16 : vector<32x1xi32>
    %c0_i32_7 = arith.constant 0 : i32
    %18 = vector.broadcast %c0_i32_7 : i32 to vector<32x1xi32>
    %19 = arith.cmpi slt, %15, %18 : vector<32x1xi32>
    %c0_i32_8 = arith.constant 0 : i32
    %20 = arith.cmpi slt, %13, %c0_i32_8 : i32
    %21 = vector.broadcast %20 : i1 to vector<32x1xi1>
    %22 = vector.broadcast %21 : vector<32x1xi1> to vector<32x1xi1>
    %23 = arith.xori %19, %22 : vector<32x1xi1>
    %24 = arith.andi %23, %17 : vector<32x1xi1>
    %25 = vector.broadcast %13 : i32 to vector<32x1xi32>
    %26 = arith.addi %15, %25 : vector<32x1xi32>
    %27 = arith.select %24, %26, %15 : vector<32x1xi1>, vector<32x1xi32>
    %c0_9 = arith.constant 0 : index
    %c0_10 = arith.constant 0 : index
    %28 = vector.load %arg8[%c0_9, %c0_10] : memref<34x128xf32, #tpu.memory_space<vmem>>, vector<32x128xf32>
    %c-1_i32 = arith.constant -1 : i32
    %29 = vector.broadcast %c-1_i32 : i32 to vector<32x1xi32>
    %30 = arith.addi %27, %29 : vector<32x1xi32>
    %c0_i32_11 = arith.constant 0 : i32
    %31 = vector.broadcast %c0_i32_11 : i32 to vector<32x1xi32>
    %32 = arith.cmpi sge, %30, %31 : vector<32x1xi32>
    %c-1_i32_12 = arith.constant -1 : i32
    %33 = vector.broadcast %c-1_i32_12 : i32 to vector<32x1xi32>
    %34 = arith.addi %27, %33 : vector<32x1xi32>
    %c16_i32_13 = arith.constant 16 : i32
    %35 = vector.broadcast %c16_i32_13 : i32 to vector<32x1xi32>
    %36 = arith.cmpi slt, %34, %35 : vector<32x1xi32>
    %37 = arith.andi %32, %36 : vector<32x1xi1>
    %cst_14 = arith.constant 0.000000e+00 : f32
    %38 = vector.shape_cast %37 : vector<32x1xi1> to vector<32x1xi1>
    %39 = vector.broadcast %38 : vector<32x1xi1> to vector<32x128xi1>
    %40 = vector.broadcast %cst_14 : f32 to vector<32x128xf32>
    %41 = arith.select %39, %28, %40 : vector<32x128xi1>, vector<32x128xf32>
    %c1_15 = arith.constant 1 : index
    %c0_16 = arith.constant 0 : index
    %42 = vector.load %arg8[%c1_15, %c0_16] : memref<34x128xf32, #tpu.memory_space<vmem>>, vector<32x128xf32>
    %c2 = arith.constant 2 : index
    %c0_17 = arith.constant 0 : index
    %43 = vector.load %arg8[%c2, %c0_17] : memref<34x128xf32, #tpu.memory_space<vmem>>, vector<32x128xf32>
    %c1_i32_18 = arith.constant 1 : i32
    %44 = vector.broadcast %c1_i32_18 : i32 to vector<32x1xi32>
    %45 = arith.addi %27, %44 : vector<32x1xi32>
    %c0_i32_19 = arith.constant 0 : i32
    %46 = vector.broadcast %c0_i32_19 : i32 to vector<32x1xi32>
    %47 = arith.cmpi sge, %45, %46 : vector<32x1xi32>
    %c1_i32_20 = arith.constant 1 : i32
    %48 = vector.broadcast %c1_i32_20 : i32 to vector<32x1xi32>
    %49 = arith.addi %27, %48 : vector<32x1xi32>
    %c16_i32_21 = arith.constant 16 : i32
    %50 = vector.broadcast %c16_i32_21 : i32 to vector<32x1xi32>
    %51 = arith.cmpi slt, %49, %50 : vector<32x1xi32>
    %52 = arith.andi %47, %51 : vector<32x1xi1>
    %cst_22 = arith.constant 0.000000e+00 : f32
    %53 = vector.shape_cast %52 : vector<32x1xi1> to vector<32x1xi1>
    %54 = vector.broadcast %53 : vector<32x1xi1> to vector<32x128xi1>
    %55 = vector.broadcast %cst_22 : f32 to vector<32x128xf32>
    %56 = arith.select %54, %43, %55 : vector<32x128xi1>, vector<32x128xf32>
    %57 = tpu.concatenate %41, %42, %56 in 1 : vector<32x128xf32>, vector<32x128xf32>, vector<32x128xf32> -> vector<32x384xf32>
    %58 = arith.truncf %57 : vector<32x384xf32> to vector<32x384xbf16>
    %c0_23 = arith.constant 0 : index
    %c0_24 = arith.constant 0 : index
    %59 = vector.load %arg4[%c0_23, %c0_24] : memref<384x128xbf16, #tpu.memory_space<vmem>>, vector<384x128xbf16>
    %cst_25 = arith.constant dense<0.000000e+00> : vector<32x128xf32>
    %60 = tpu.matmul %58, %59, %cst_25 {dimension_numbers = #tpu.dot_dimension_numbers<[1], [0], [0], [1], [0, 0, 1, 1], [], []>} : vector<32x384xbf16>, vector<384x128xbf16>, vector<32x128xf32> -> vector<32x128xf32>
    %c0_26 = arith.constant 0 : index
    %c0_27 = arith.constant 0 : index
    %61 = vector.load %arg5[%c0_26, %c0_27] : memref<1x128xf32, #tpu.memory_space<vmem>>, vector<1x128xf32>
    %62 = vector.broadcast %61 : vector<1x128xf32> to vector<32x128xf32>
    %63 = arith.addf %60, %62 : vector<32x128xf32>
    %64 = arith.truncf %63 : vector<32x128xf32> to vector<32x128xbf16>
    %c0_28 = arith.constant 0 : index
    %c0_29 = arith.constant 0 : index
    %65 = vector.load %arg6[%c0_28, %c0_29] : memref<32x128xbf16, #tpu.memory_space<vmem>>, vector<32x128xbf16>
    tpu.vector_store %arg6[%c0_28, %c0_29], %64 {strides = array<i32>} : memref<32x128xbf16, #tpu.memory_space<vmem>>, vector<32x128xbf16>,
    %cst_30 = arith.constant dense<0.000000e+00> : vector<128xf32>
    %66 = vector.multi_reduction <add>, %63, %cst_30 [0] : vector<32x128xf32> to vector<128xf32>
    %67 = vector.shape_cast %66 : vector<128xf32> to vector<1x128xf32>
    %c0_31 = arith.constant 0 : index
    %c0_32 = arith.constant 0 : index
    %c0_33 = arith.constant 0 : index
    %68 = vector.load %arg7[%c0_31, %c0_32, %c0_33] : memref<1x2x128xf32, #tpu.memory_space<vmem>>, vector<1x1x128xf32>
    %69 = vector.shape_cast %68 : vector<1x1x128xf32> to vector<1x128xf32>
    %70 = vector.shape_cast %67 : vector<1x128xf32> to vector<1x1x128xf32>
    tpu.vector_store %arg7[%c0_31, %c0_32, %c0_33], %70 {strides = array<i32>} : memref<1x2x128xf32, #tpu.memory_space<vmem>>, vector<1x1x128xf32>,
    %71 = arith.mulf %63, %63 : vector<32x128xf32>
    %cst_34 = arith.constant dense<0.000000e+00> : vector<128xf32>
    %72 = vector.multi_reduction <add>, %71, %cst_34 [0] : vector<32x128xf32> to vector<128xf32>
    %73 = vector.shape_cast %72 : vector<128xf32> to vector<1x128xf32>
    %c0_35 = arith.constant 0 : index
    %c1_36 = arith.constant 1 : index
    %c0_37 = arith.constant 0 : index
    %74 = vector.load %arg7[%c0_35, %c1_36, %c0_37] : memref<1x2x128xf32, #tpu.memory_space<vmem>>, vector<1x1x128xf32>
    %75 = vector.shape_cast %74 : vector<1x1x128xf32> to vector<1x128xf32>
    %76 = vector.shape_cast %73 : vector<1x128xf32> to vector<1x1x128xf32>
    tpu.vector_store %arg7[%c0_35, %c1_36, %c0_37], %76 {strides = array<i32>} : memref<1x2x128xf32, #tpu.memory_space<vmem>>, vector<1x1x128xf32>,
    return
  }
  func.func @transform_0(%arg0: i32) -> (i32, i32) {
    %c0_i32 = arith.constant 0 : i32
    %c0_i32_0 = arith.constant 0 : i32
    return %arg0, %c0_i32 : i32, i32
  }
  func.func @transform_1(%arg0: i32) -> (i32, i32) {
    %c0_i32 = arith.constant 0 : i32
    %c0_i32_0 = arith.constant 0 : i32
    %c0_i32_1 = arith.constant 0 : i32
    return %c0_i32, %c0_i32_0 : i32, i32
  }
  func.func @transform_2(%arg0: i32) -> (i32, i32) {
    %c0_i32 = arith.constant 0 : i32
    %c0_i32_0 = arith.constant 0 : i32
    %c0_i32_1 = arith.constant 0 : i32
    return %c0_i32, %c0_i32_0 : i32, i32
  }
  func.func @transform_3(%arg0: i32) -> (i32, i32) {
    %c0_i32 = arith.constant 0 : i32
    %c0_i32_0 = arith.constant 0 : i32
    %c0_i32_1 = arith.constant 0 : i32
    return %c0_i32, %c0_i32_0 : i32, i32
  }
  func.func @transform_4(%arg0: i32) -> (i32, i32) {
    %c0_i32 = arith.constant 0 : i32
    %c0_i32_0 = arith.constant 0 : i32
    %c0_i32_1 = arith.constant 0 : i32
    return %c0_i32, %c0_i32_0 : i32, i32
  }
  func.func @transform_5(%arg0: i32) -> (i32, i32) {
    %c0_i32 = arith.constant 0 : i32
    %c0_i32_0 = arith.constant 0 : i32
    return %arg0, %c0_i32 : i32, i32
  }
  func.func @transform_6(%arg0: i32) -> (i32, i32, i32) {
    %c0_i32 = arith.constant 0 : i32
    %c0_i32_0 = arith.constant 0 : i32
    %c0_i32_1 = arith.constant 0 : i32
    return %arg0, %c0_i32, %c0_i32_0 : i32, i32, i32
  }
}

module attributes {stable_mosaic.version = 11 : i64} {
  func.func @_conv_block_kernel(%arg0: i32, %arg1: memref<32x128xbf16, #tpu.memory_space<vmem>>, %arg2: memref<1x128xf32, #tpu.memory_space<vmem>>, %arg3: memref<1x128xf32, #tpu.memory_space<vmem>>, %arg4: memref<384x128xbf16, #tpu.memory_space<vmem>>, %arg5: memref<1x128xf32, #tpu.memory_space<vmem>>, %arg6: memref<32x128xbf16, #tpu.memory_space<vmem>>, %arg7: memref<32x128xf32, #tpu.memory_space<vmem>>, %arg8: memref<34x128xf32, #tpu.memory_space<vmem>>) attributes {dimension_semantics = [#tpu.dimension_semantics<parallel>], iteration_bounds = array<i64: 1>, scalar_prefetch = 0 : i64, scratch_operands = 1 : i64, tpu.core_type = #tpu.core_type<tc>, window_params = [{transform_indices = @transform_0, window_bounds = array<i64: 32, 128>}, {pipeline_mode = #tpu.pipeline_mode<synchronous>, transform_indices = @transform_1, window_bounds = array<i64: 1, 128>}, {pipeline_mode = #tpu.pipeline_mode<synchronous>, transform_indices = @transform_2, window_bounds = array<i64: 1, 128>}, {pipeline_mode = #tpu.pipeline_mode<synchronous>, transform_indices = @transform_3, window_bounds = array<i64: 384, 128>}, {pipeline_mode = #tpu.pipeline_mode<synchronous>, transform_indices = @transform_4, window_bounds = array<i64: 1, 128>}, {transform_indices = @transform_5, window_bounds = array<i64: 32, 128>}, {transform_indices = @transform_6, window_bounds = array<i64: 32, 128>}]} {
    %c0 = arith.constant 0 : index
    %c0_0 = arith.constant 0 : index
    %0 = vector.load %arg1[%c0, %c0_0] : memref<32x128xbf16, #tpu.memory_space<vmem>>, vector<32x128xbf16>
    %1 = arith.extf %0 : vector<32x128xbf16> to vector<32x128xf32>
    %c0_1 = arith.constant 0 : index
    %c0_2 = arith.constant 0 : index
    %2 = vector.load %arg2[%c0_1, %c0_2] : memref<1x128xf32, #tpu.memory_space<vmem>>, vector<1x128xf32>
    %3 = vector.broadcast %2 : vector<1x128xf32> to vector<32x128xf32>
    %4 = arith.mulf %1, %3 : vector<32x128xf32>
    %c0_3 = arith.constant 0 : index
    %c0_4 = arith.constant 0 : index
    %5 = vector.load %arg3[%c0_3, %c0_4] : memref<1x128xf32, #tpu.memory_space<vmem>>, vector<1x128xf32>
    %6 = vector.broadcast %5 : vector<1x128xf32> to vector<32x128xf32>
    %7 = arith.addf %4, %6 : vector<32x128xf32>
    %cst = arith.constant 0.000000e+00 : f32
    %8 = vector.broadcast %cst : f32 to vector<32x128xf32>
    %9 = arith.maximumf %7, %8 : vector<32x128xf32>
    %c1 = arith.constant 1 : index
    %c0_5 = arith.constant 0 : index
    %10 = vector.load %arg8[%c1, %c0_5] : memref<34x128xf32, #tpu.memory_space<vmem>>, vector<32x128xf32>
    tpu.vector_store %arg8[%c1, %c0_5], %9 {strides = array<i32>} : memref<34x128xf32, #tpu.memory_space<vmem>>, vector<32x128xf32>,
    %11 = tpu.iota {dimensions = array<i32: 0>} : vector<32x1xi32>
    %c16_i32 = arith.constant 16 : i32
    %c0_i32 = arith.constant 0 : i32
    %12 = arith.cmpi eq, %c16_i32, %c0_i32 : i32
    %c1_i32 = arith.constant 1 : i32
    %13 = arith.select %12, %c1_i32, %c16_i32 : i32
    %14 = vector.broadcast %13 : i32 to vector<32x1xi32>
    %15 = arith.remsi %11, %14 : vector<32x1xi32>
    %c0_i32_6 = arith.constant 0 : i32
    %16 = vector.broadcast %c0_i32_6 : i32 to vector<32x1xi32>
    %17 = arith.cmpi ne, %15, %16 : vector<32x1xi32>
    %c0_i32_7 = arith.constant 0 : i32
    %18 = vector.broadcast %c0_i32_7 : i32 to vector<32x1xi32>
    %19 = arith.cmpi slt, %15, %18 : vector<32x1xi32>
    %c0_i32_8 = arith.constant 0 : i32
    %20 = arith.cmpi slt, %13, %c0_i32_8 : i32
    %21 = vector.broadcast %20 : i1 to vector<32x1xi1>
    %22 = vector.broadcast %21 : vector<32x1xi1> to vector<32x1xi1>
    %23 = arith.xori %19, %22 : vector<32x1xi1>
    %24 = arith.andi %23, %17 : vector<32x1xi1>
    %25 = vector.broadcast %13 : i32 to vector<32x1xi32>
    %26 = arith.addi %15, %25 : vector<32x1xi32>
    %27 = arith.select %24, %26, %15 : vector<32x1xi1>, vector<32x1xi32>
    %c0_9 = arith.constant 0 : index
    %c0_10 = arith.constant 0 : index
    %28 = vector.load %arg8[%c0_9, %c0_10] : memref<34x128xf32, #tpu.memory_space<vmem>>, vector<32x128xf32>
    %c-1_i32 = arith.constant -1 : i32
    %29 = vector.broadcast %c-1_i32 : i32 to vector<32x1xi32>
    %30 = arith.addi %27, %29 : vector<32x1xi32>
    %c0_i32_11 = arith.constant 0 : i32
    %31 = vector.broadcast %c0_i32_11 : i32 to vector<32x1xi32>
    %32 = arith.cmpi sge, %30, %31 : vector<32x1xi32>
    %c-1_i32_12 = arith.constant -1 : i32
    %33 = vector.broadcast %c-1_i32_12 : i32 to vector<32x1xi32>
    %34 = arith.addi %27, %33 : vector<32x1xi32>
    %c16_i32_13 = arith.constant 16 : i32
    %35 = vector.broadcast %c16_i32_13 : i32 to vector<32x1xi32>
    %36 = arith.cmpi slt, %34, %35 : vector<32x1xi32>
    %37 = arith.andi %32, %36 : vector<32x1xi1>
    %cst_14 = arith.constant 0.000000e+00 : f32
    %38 = vector.shape_cast %37 : vector<32x1xi1> to vector<32x1xi1>
    %39 = vector.broadcast %38 : vector<32x1xi1> to vector<32x128xi1>
    %40 = vector.broadcast %cst_14 : f32 to vector<32x128xf32>
    %41 = arith.select %39, %28, %40 : vector<32x128xi1>, vector<32x128xf32>
    %c1_15 = arith.constant 1 : index
    %c0_16 = arith.constant 0 : index
    %42 = vector.load %arg8[%c1_15, %c0_16] : memref<34x128xf32, #tpu.memory_space<vmem>>, vector<32x128xf32>
    %c2 = arith.constant 2 : index
    %c0_17 = arith.constant 0 : index
    %43 = vector.load %arg8[%c2, %c0_17] : memref<34x128xf32, #tpu.memory_space<vmem>>, vector<32x128xf32>
    %c1_i32_18 = arith.constant 1 : i32
    %44 = vector.broadcast %c1_i32_18 : i32 to vector<32x1xi32>
    %45 = arith.addi %27, %44 : vector<32x1xi32>
    %c0_i32_19 = arith.constant 0 : i32
    %46 = vector.broadcast %c0_i32_19 : i32 to vector<32x1xi32>
    %47 = arith.cmpi sge, %45, %46 : vector<32x1xi32>
    %c1_i32_20 = arith.constant 1 : i32
    %48 = vector.broadcast %c1_i32_20 : i32 to vector<32x1xi32>
    %49 = arith.addi %27, %48 : vector<32x1xi32>
    %c16_i32_21 = arith.constant 16 : i32
    %50 = vector.broadcast %c16_i32_21 : i32 to vector<32x1xi32>
    %51 = arith.cmpi slt, %49, %50 : vector<32x1xi32>
    %52 = arith.andi %47, %51 : vector<32x1xi1>
    %cst_22 = arith.constant 0.000000e+00 : f32
    %53 = vector.shape_cast %52 : vector<32x1xi1> to vector<32x1xi1>
    %54 = vector.broadcast %53 : vector<32x1xi1> to vector<32x128xi1>
    %55 = vector.broadcast %cst_22 : f32 to vector<32x128xf32>
    %56 = arith.select %54, %43, %55 : vector<32x128xi1>, vector<32x128xf32>
    %57 = tpu.concatenate %41, %42, %56 in 1 : vector<32x128xf32>, vector<32x128xf32>, vector<32x128xf32> -> vector<32x384xf32>
    %58 = arith.truncf %57 : vector<32x384xf32> to vector<32x384xbf16>
    %c0_23 = arith.constant 0 : index
    %c0_24 = arith.constant 0 : index
    %59 = vector.load %arg4[%c0_23, %c0_24] : memref<384x128xbf16, #tpu.memory_space<vmem>>, vector<384x128xbf16>
    %cst_25 = arith.constant dense<0.000000e+00> : vector<32x128xf32>
    %60 = tpu.matmul %58, %59, %cst_25 {dimension_numbers = #tpu.dot_dimension_numbers<[1], [0], [0], [1], [0, 0, 1, 1], [], []>} : vector<32x384xbf16>, vector<384x128xbf16>, vector<32x128xf32> -> vector<32x128xf32>
    %c0_26 = arith.constant 0 : index
    %c0_27 = arith.constant 0 : index
    %61 = vector.load %arg5[%c0_26, %c0_27] : memref<1x128xf32, #tpu.memory_space<vmem>>, vector<1x128xf32>
    %62 = vector.broadcast %61 : vector<1x128xf32> to vector<32x128xf32>
    %63 = arith.addf %60, %62 : vector<32x128xf32>
    %c0_28 = arith.constant 0 : index
    %c0_29 = arith.constant 0 : index
    %64 = vector.load %arg6[%c0_28, %c0_29] : memref<32x128xbf16, #tpu.memory_space<vmem>>, vector<32x128xbf16>
    %65 = arith.extf %64 : vector<32x128xbf16> to vector<32x128xf32>
    %66 = arith.addf %63, %65 : vector<32x128xf32>
    %c0_30 = arith.constant 0 : index
    %c0_31 = arith.constant 0 : index
    %67 = vector.load %arg7[%c0_30, %c0_31] : memref<32x128xf32, #tpu.memory_space<vmem>>, vector<32x128xf32>
    tpu.vector_store %arg7[%c0_30, %c0_31], %66 {strides = array<i32>} : memref<32x128xf32, #tpu.memory_space<vmem>>, vector<32x128xf32>,
    return
  }
  func.func @transform_0(%arg0: i32) -> (i32, i32) {
    %c0_i32 = arith.constant 0 : i32
    %c0_i32_0 = arith.constant 0 : i32
    return %arg0, %c0_i32 : i32, i32
  }
  func.func @transform_1(%arg0: i32) -> (i32, i32) {
    %c0_i32 = arith.constant 0 : i32
    %c0_i32_0 = arith.constant 0 : i32
    %c0_i32_1 = arith.constant 0 : i32
    return %c0_i32, %c0_i32_0 : i32, i32
  }
  func.func @transform_2(%arg0: i32) -> (i32, i32) {
    %c0_i32 = arith.constant 0 : i32
    %c0_i32_0 = arith.constant 0 : i32
    %c0_i32_1 = arith.constant 0 : i32
    return %c0_i32, %c0_i32_0 : i32, i32
  }
  func.func @transform_3(%arg0: i32) -> (i32, i32) {
    %c0_i32 = arith.constant 0 : i32
    %c0_i32_0 = arith.constant 0 : i32
    %c0_i32_1 = arith.constant 0 : i32
    return %c0_i32, %c0_i32_0 : i32, i32
  }
  func.func @transform_4(%arg0: i32) -> (i32, i32) {
    %c0_i32 = arith.constant 0 : i32
    %c0_i32_0 = arith.constant 0 : i32
    %c0_i32_1 = arith.constant 0 : i32
    return %c0_i32, %c0_i32_0 : i32, i32
  }
  func.func @transform_5(%arg0: i32) -> (i32, i32) {
    %c0_i32 = arith.constant 0 : i32
    %c0_i32_0 = arith.constant 0 : i32
    return %arg0, %c0_i32 : i32, i32
  }
  func.func @transform_6(%arg0: i32) -> (i32, i32) {
    %c0_i32 = arith.constant 0 : i32
    %c0_i32_0 = arith.constant 0 : i32
    return %arg0, %c0_i32 : i32, i32
  }
}

</mosaic_0001>

<bundles_post_ra>
// kernel: tile.78
= control target key start
LH: loop header
LB: loop body
LE: loop exit
PB: predicated region body
PF: predicated region fallthrough
CT: control target
= control target key end

     0   :  { %s28_s0 = inlined_call_operand.vmem [shape: f32[8], index: 0, kind: input, shape index: {}]   ;;  %s29_s1 = inlined_call_operand.vmem [shape: f32[16,8], index: 1, kind: output, shape index: {}]  }
   0x1   :  { %v4_v0 = vld [vmem:[%s28_s0] ss:$0 sm:$0xff] }
   0x2   :  { %5 = vst [vmem:[%s29_s1] sm:$0xff] %v4_v0 }
   0x3   :  { %8 = vst [vmem:[%s29_s1 + $0x8] sm:$0xff] %v4_v0 }

// kernel: tile.79
= control target key start
LH: loop header
LB: loop body
LE: loop exit
PB: predicated region body
PF: predicated region fallthrough
CT: control target
= control target key end

     0   :  { %s131_s10 = smov 120   ;;  %s132_s11 = smov 104   ;;  %vm3_vm0 = vcmask 64512   ;;  %vm9_vm1 = vcmask 1048512   ;;  %vm15_vm2 = vcmask 982912   ;;  %vm21_vm3 = vcmask 917312   ;;  %s207_s0 = inlined_call_operand.vmem [shape: f32[16,8], index: 0, kind: input, shape index: {}]   ;;  %s208_s1 = inlined_call_operand.vmem [shape: f32[1,128], index: 1, kind: output, shape index: {}]  }
   0x1   :  { %v101_v0 = vld [vmem:[%s207_s0 + $0xf] sm:$0x1]   ;;  %v103_v1 = vld [vmem:[%s207_s0 + $0xd] sm:$0x1]   ;;  %v105_v2 = vld [vmem:[%s207_s0 + $0xb] sm:$0x1]  }
   0x2   :  { %7 = vrot.lane.b32.xlu0 %v101_v0, %s131_s10  ;;  %19 = vrot.lane.b32.xlu1 %v103_v1, %s132_s11  ;;  %s133_s14 = smov 88   ;;  %v102_v3 = vld [vmem:[%s207_s0 + $0xe] sm:$0x1]   ;;  %v104_v4 = vld [vmem:[%s207_s0 + $0xc] sm:$0x1]   ;;  %s134_s19 = smov 112  }
   0x3   :  { %31 = vrot.lane.b32.xlu2 %v105_v2, %s133_s14  ;;  %s135_s20 = smov 96   ;;  %v106_v5 = vld [vmem:[%s207_s0 + $0xa] sm:$0x1]   ;;  %s136_s23 = smov 80   ;;  %v107_v6 = vld [vmem:[%s207_s0 + $0x9] sm:$0x1]  }
   0x4   :  { %v108_v7 = vld [vmem:[%s207_s0 + $0x8] sm:$0x1]   ;;  %s137_s28 = smov 72   ;;  %s138_s29 = smov 64   ;;  %v109_v8 = vld [vmem:[%s207_s0 + $0x7] sm:$0x1]  }
   0x5   :  { %s139_s3 = smov 56   ;;  %v110_v9 = vld [vmem:[%s207_s0 + $0x6] sm:$0x1]   ;;  %v111_v10 = vld [vmem:[%s207_s0 + $0x5] sm:$0x1]   ;;  %s140_s8 = smov 48  }
   0x6   :  { %s141_s9 = smov 40   ;;  %v112_v11 = vld [vmem:[%s207_s0 + $0x4] sm:$0x1]   ;;  %s142_s12 = smov 32   ;;  %v113_v12 = vld [vmem:[%s207_s0 + $0x3] sm:$0x1]  }
   0x7   :  { %v114_v13 = vld [vmem:[%s207_s0 + $0x2] sm:$0x1]   ;;  %s143_s17 = smov 24   ;;  %s144_s18 = smov 16   ;;  %v115_v14 = vld [vmem:[%s207_s0 + $0x1] sm:$0x1]  }
   0x8   :  { %s145_s21 = smov 8   ;;  %v2_v15 = vld [vmem:[%s207_s0] sm:$0x1]   ;;  %vm27_vm4 = vcmask 851712   ;;  %vm33_vm5 = vcmask 786112   ;;  %vm39_vm6 = vcmask 720512  }
   0x9   :  { %4 = vst.msk [vmem:[#allocation0] sm:$0x1] %vm3_vm0, %v2_v15   ;;  %vm45_vm7 = vcmask 654912   ;;  %vm51_vm8 = vcmask 589312   ;;  %vm57_vm9 = vcmask 523712   ;;  %vm63_vm10 = vcmask 458112  }
   0xa   :  { %13 = vrot.lane.b32.xlu0 %v102_v3, %s134_s19  ;;  %25 = vrot.lane.b32.xlu1 %v104_v4, %s135_s20  ;;  %vm69_vm11 = vcmask 392512   ;;  %vm75_vm12 = vcmask 326912   ;;  %vm81_vm13 = vcmask 261312   ;;  %vm87_vm14 = vcmask 195712  }
   0xb   :  { %37 = vrot.lane.b32.xlu2 %v106_v5, %s136_s23  ;;  %vm93_vm15 = vcmask 130112  }
  0x12   :  { %43 = vrot.lane.b32.xlu0 %v107_v6, %s137_s28  ;;  %49 = vrot.lane.b32.xlu1 %v108_v7, %s138_s29 }
  0x13   :  { %55 = vrot.lane.b32.xlu2 %v109_v8, %s139_s3 }
  0x1a   :  { %61 = vrot.lane.b32.xlu0 %v110_v9, %s140_s8  ;;  %67 = vrot.lane.b32.xlu1 %v111_v10, %s141_s9 }
  0x1b   :  { %73 = vrot.lane.b32.xlu2 %v112_v11, %s142_s12 }
  0x22   :  { %79 = vrot.lane.b32.xlu0 %v113_v12, %s143_s17  ;;  %85 = vrot.lane.b32.xlu1 %v114_v13, %s144_s18 }
  0x23   :  { %91 = vrot.lane.b32.xlu2 %v115_v14, %s145_s21 }
  0x5d   :  { %v32_v16 = vpop.permute.xlu2 %31  }
  0x65   :  { %v38_v17 = vpop.permute.xlu2 %37  }
  0x6d   :  { %v56_v18 = vpop.permute.xlu2 %55  }
  0x74   :  { %v8_v19 = vpop.permute.xlu0 %7   ;;  %v20_v20 = vpop.permute.xlu1 %19  }
  0x75   :  { %10 = vst.msk [vmem:[#allocation0] sm:$0x1] %vm9_vm1, %v8_v19   ;;  %v74_v21 = vpop.permute.xlu2 %73  }
  0x7c   :  { %v14_v22 = vpop.permute.xlu0 %13   ;;  %v26_v23 = vpop.permute.xlu1 %25  }
  0x7d   :  { %16 = vst.msk [vmem:[#allocation0] sm:$0x1] %vm15_vm2, %v14_v22   ;;  %v92_v24 = vpop.permute.xlu2 %91  }
  0x7e   :  { %22 = vst.msk [vmem:[#allocation0] sm:$0x1] %vm21_vm3, %v20_v20  }
  0x7f   :  { %28 = vst.msk [vmem:[#allocation0] sm:$0x1] %vm27_vm4, %v26_v23  }
  0x80   :  { %34 = vst.msk [vmem:[#allocation0] sm:$0x1] %vm33_vm5, %v32_v16  }
  0x81   :  { %40 = vst.msk [vmem:[#allocation0] sm:$0x1] %vm39_vm6, %v38_v17  }
  0x84   :  { %v44_v25 = vpop.permute.xlu0 %43   ;;  %v50_v26 = vpop.permute.xlu1 %49  }
  0x85   :  { %46 = vst.msk [vmem:[#allocation0] sm:$0x1] %vm45_vm7, %v44_v25  }
  0x86   :  { %52 = vst.msk [vmem:[#allocation0] sm:$0x1] %vm51_vm8, %v50_v26  }
  0x87   :  { %58 = vst.msk [vmem:[#allocation0] sm:$0x1] %vm57_vm9, %v56_v18  }
  0x8c   :  { %v62_v27 = vpop.permute.xlu0 %61   ;;  %v68_v28 = vpop.permute.xlu1 %67  }
  0x8d   :  { %64 = vst.msk [vmem:[#allocation0] sm:$0x1] %vm63_vm10, %v62_v27  }
  0x8e   :  { %70 = vst.msk [vmem:[#allocation0] sm:$0x1] %vm69_vm11, %v68_v28  }
  0x8f   :  { %76 = vst.msk [vmem:[#allocation0] sm:$0x1] %vm75_vm12, %v74_v21  }
  0x94   :  { %v80_v29 = vpop.permute.xlu0 %79   ;;  %v86_v30 = vpop.permute.xlu1 %85  }
  0x95   :  { %82 = vst.msk [vmem:[#allocation0] sm:$0x1] %vm81_vm13, %v80_v29  }
  0x96   :  { %88 = vst.msk [vmem:[#allocation0] sm:$0x1] %vm87_vm14, %v86_v30  }
  0x97   :  { %94 = vst.msk [vmem:[#allocation0] sm:$0x1] %vm93_vm15, %v92_v24  }
  0x9e   :  { %v97_v31 = vld [vmem:[#allocation0] sm:$0x1] }
  0x9f   :  { %100 = vst [vmem:[%s208_s1] sm:$0x1] %v97_v31 }

// kernel: resdown_forward.4
= control target key start
LH: loop header
LB: loop body
LE: loop exit
PB: predicated region body
PF: predicated region fallthrough
CT: control target
= control target key end

     0   :  { %v60_v12 = vlaneseq  ;;  %vm789_vm2 = vmmov 1   ;;  %s1026_s3 = inlined_call_operand.vmem [shape: bf16[384,128], index: 3, kind: input, shape index: {}]   ;;  %s1027_s6 = inlined_call_operand.vmem [shape: bf16[128,128], index: 6, kind: input, shape index: {}]   ;;  %s1028_s0 = inlined_call_operand.vmem [shape: f32[32,128], index: 0, kind: input, shape index: {}]   ;;  %s1029_s1 = inlined_call_operand.vmem [shape: f32[1,128], index: 1, kind: input, shape index: {}]   ;;  %s1030_s2 = inlined_call_operand.vmem [shape: f32[1,128], index: 2, kind: input, shape index: {}]   ;;  %s1031_s5 = inlined_call_operand.vmem [shape: f32[1,128], index: 5, kind: input, shape index: {}]   ;;  %s1032_s4 = inlined_call_operand.vmem [shape: f32[1,128], index: 4, kind: input, shape index: {}]   ;;  %s1033_s7 = inlined_call_operand.vmem [shape: f32[1,128], index: 7, kind: input, shape index: {}]   ;;  %s1034_s8 = inlined_call_operand.vmem [shape: bf16[32,128], index: 8, kind: output, shape index: {0}]   ;;  %s1035_s9 = inlined_call_operand.vmem [shape: bf16[32,128], index: 9, kind: output, shape index: {1}]   ;;  %s1036_s10 = inlined_call_operand.vmem [shape: f32[1,2,128], index: 10, kind: output, shape index: {2}]  }
   0x1   :  { %v736_v0 = vld [vmem:[%s1026_s3 + $0x38] sm:$0xff]  ;;  %v735_v3 = vld [vmem:[%s1026_s3 + $0x30] sm:$0xff]  ;;  %v734_v8 = vld [vmem:[%s1026_s3 + $0x28] sm:$0xff] }
   0x2   :  { %v744_v1 = vld [vmem:[%s1026_s3 + $0x78] sm:$0xff]  ;;  %383 = vmatpush.bf16.msra.mxu0 %v736_v0  ;;  %v743_v4 = vld [vmem:[%s1026_s3 + $0x70] sm:$0xff]  ;;  %v742_v9 = vld [vmem:[%s1026_s3 + $0x68] sm:$0xff]  ;;  %v909_v21 = vshrl.u32 %v60_v12, 7 }
   0x3   :  { %v752_v2 = vld [vmem:[%s1026_s3 + $0xb8] sm:$0xff]  ;;  %402 = vmatpush.bf16.msra.mxu1 %v744_v1  ;;  %v751_v6 = vld [vmem:[%s1026_s3 + $0xb0] sm:$0xff]  ;;  %v750_v10 = vld [vmem:[%s1026_s3 + $0xa8] sm:$0xff] }
   0x4   :  { %v760_v5 = vld [vmem:[%s1027_s6 + $0x38] sm:$0xff]  ;;  %421 = vmatpush.bf16.msra.mxu2 %v752_v2  ;;  %v759_v7 = vld [vmem:[%s1027_s6 + $0x30] sm:$0xff]  ;;  %v758_v11 = vld [vmem:[%s1027_s6 + $0x28] sm:$0xff]  ;;  %v62_v35 = vadd.s32 8, %v909_v21  ;;  %v69_v43 = vand.u32 15, %v909_v21 }
   0x5   :  { %550 = vmatpush.bf16.msra.mxu3 %v760_v5  ;;  %v733_v13 = vld [vmem:[%s1026_s3 + $0x20] sm:$0xff]  ;;  %v898_v17 = vld [vmem:[%s1028_s0 + $0x8] sm:$0xff]  ;;  %v914_v22 = vld [vmem:[%s1028_s0 + $0x10] sm:$0xff]  ;;  %v64_v5 = vadd.s32 24, %v909_v21 }
   0x6   :  { %384 = vmatpush.bf16.msra.mxu0 %v735_v3  ;;  %v741_v14 = vld [vmem:[%s1026_s3 + $0x60] sm:$0xff]  ;;  %v732_v26 = vld [vmem:[%s1026_s3 + $0x18] sm:$0xff]  ;;  %v731_v40 = vld [vmem:[%s1026_s3 + $0x10] sm:$0xff]  ;;  %v76_v46 = vand.u32 15, %v62_v35  ;;  %v117_v50 = vadd.s32 4294967295, %v69_v43 }
   0x7   :  { %403 = vmatpush.bf16.msra.mxu1 %v743_v4  ;;  %v749_v15 = vld [vmem:[%s1026_s3 + $0xa0] sm:$0xff]  ;;  %v740_v27 = vld [vmem:[%s1026_s3 + $0x58] sm:$0xff]  ;;  %v739_v41 = vld [vmem:[%s1026_s3 + $0x50] sm:$0xff]  ;;  %v63_v4 = vadd.s32 16, %v909_v21 }
   0x8   :  { %422 = vmatpush.bf16.msra.mxu2 %v751_v6  ;;  %v893_v16 = vld [vmem:[%s1028_s0] sm:$0xff]  ;;  %v928_v28 = vld [vmem:[%s1028_s0 + $0x18] sm:$0xff]  ;;  %v747_v42 = vld [vmem:[%s1026_s3 + $0x90] sm:$0xff]  ;;  %v154_v53 = vadd.s32 1, %v76_v46  ;;  %vm121_vm0 = vcmp.ge.s32.totalorder %v117_v50, 0 }
   0x9   :  { %551 = vmatpush.bf16.msra.mxu3 %v759_v7  ;;  %v784_v18 = vld [vmem:[%s1029_s1] ss:$0 sm:$0xff]  ;;  %v748_v29 = vld [vmem:[%s1026_s3 + $0x98] sm:$0xff]  ;;  %v755_v45 = vld [vmem:[%s1027_s6 + $0x10] sm:$0xff]  ;;  %v83_v6 = vand.u32 15, %v63_v4  ;;  %v90_v7 = vand.u32 15, %v64_v5 }
   0xa   :  { %385 = vmatpush.bf16.msra.mxu0 %v734_v8  ;;  %v757_v19 = vld [vmem:[%s1027_s6 + $0x20] sm:$0xff]  ;;  %v40_v23 = vmul.f32 %v784_v18, %v893_v16  ;;  %v41_v24 = vmul.f32 %v784_v18, %v898_v17  ;;  %v42_v25 = vmul.f32 %v784_v18, %v914_v22  ;;  %v43_v33 = vmul.f32 %v784_v18, %v928_v28  ;;  %v756_v34 = vld [vmem:[%s1027_s6 + $0x18] sm:$0xff]  ;;  %v730_v47 = vld [vmem:[%s1026_s3 + $0x8] sm:$0xff] }
   0xb   :  { %404 = vmatpush.bf16.msra.mxu1 %v742_v9  ;;  %v785_v20 = vld [vmem:[%s1030_s2] ss:$0 sm:$0xff]  ;;  %v738_v48 = vld [vmem:[%s1026_s3 + $0x48] sm:$0xff]  ;;  %vm162_vm1 = vcmp.lt.s32.totalorder %v154_v53, 16  ;;  %vm685_vm3 = vmpackc.low %vm789_vm2, %vm121_vm0  ;;  %v119_v8 = vadd.s32 4294967295, %v83_v6  ;;  %v156_v9 = vadd.s32 1, %v90_v7 }
   0xc   :  { %423 = vmatpush.bf16.msra.mxu2 %v750_v10  ;;  %v48_v30 = vadd.f32 %v785_v20, %v40_v23  ;;  %v49_v31 = vadd.f32 %v785_v20, %v41_v24  ;;  %v933_v32 = vadd.f32 %v785_v20, %v42_v25  ;;  %v941_v39 = vadd.f32 %v785_v20, %v43_v33  ;;  %v746_v49 = vld [vmem:[%s1026_s3 + $0x88] sm:$0xff]  ;;  %v786_v51 = vld [vmem:[%s1031_s5] ss:$0 sm:$0xff]  ;;  %vm691_vm4 = vmpackc.low %vm162_vm1, %vm789_vm2 }
   0xd   :  { %552 = vmatpush.bf16.msra.mxu3 %v758_v11  ;;  %v754_v52 = vld [vmem:[%s1027_s6 + $0x8] sm:$0xff]  ;;  %v729_v54 = vld [vmem:[%s1026_s3] sm:$0xff]  ;;  %v476_v60 = vmul.f32 %v786_v51, %v893_v16  ;;  %v477_v61 = vmul.f32 %v786_v51, %v898_v17  ;;  %vm123_vm5 = vcmp.ge.s32.totalorder %v119_v8, 0  ;;  %vm164_vm6 = vcmp.lt.s32.totalorder %v156_v9, 16 }
   0xe   :  { %386 = vmatpush.bf16.msra.mxu0 %v733_v13  ;;  %v52_v36 = vmax.f32 %v48_v30, 0.0  ;;  %v53_v37 = vmax.f32 %v49_v31, 0.0  ;;  %v54_v38 = vmax.f32 %v933_v32, 0.0  ;;  %v55_v44 = vmax.f32 %v941_v39, 0.0  ;;  %v737_v55 = vld [vmem:[%s1026_s3 + $0x40] sm:$0xff]  ;;  %vm688_vm7 = vmpackc.low %vm789_vm2, %vm123_vm5 }
   0xf   :  { %405 = vmatpush.bf16.msra.mxu1 %v741_v14  ;;  %v745_v57 = vld [vmem:[%s1026_s3 + $0x80] sm:$0xff]  ;;  %v480_v3 = vpack.c.bf16 %v477_v61, %v476_v60  ;;  %v478_v14 = vmul.f32 %v786_v51, %v914_v22  ;;  %vm694_vm8 = vmpackc.low %vm164_vm6, %vm789_vm2 }
  0x10   :  { %424 = vmatpush.bf16.msra.mxu2 %v749_v15  ;;  %56 = vst [vmem:[#allocation2 + $0x1] sm:$0xff] %v52_v36  ;;  %v753_v63 = vld [vmem:[%s1027_s6] sm:$0xff]  ;;  %v182_v1 = vpack.c.bf16 %v53_v37, %v52_v36  ;;  %v479_v15 = vmul.f32 %v786_v51, %v928_v28  ;;  %v185_v17 = vpack.c.bf16 %v55_v44, %v54_v38 }
  0x11   :  { %553 = vmatpush.bf16.msra.mxu3 %v757_v19  ;;  %57 = vst [vmem:[#allocation2 + $0x9] sm:$0xff] %v53_v37  ;;  %v787_v22 = vld [vmem:[%s1032_s4] ss:$0 sm:$0xff] }
  0x12   :  { %387 = vmatpush.bf16.msra.mxu0 %v732_v26  ;;  %58 = vst [vmem:[#allocation2 + $0x11] sm:$0xff] %v54_v38  ;;  %v481_v19 = vpack.c.bf16 %v479_v15, %v478_v14  ;;  %v788_v30 = vld [vmem:[%s1033_s7] ss:$0 sm:$0xff] }
  0x13   :  { %406 = vmatpush.bf16.msra.mxu1 %v740_v27  ;;  %59 = vst [vmem:[#allocation2 + $0x19] sm:$0xff] %v55_v44 }
  0x14   :  { %425 = vmatpush.bf16.msra.mxu2 %v748_v29 }
  0x15   :  { %554 = vmatpush.bf16.msra.mxu3 %v756_v34 }
  0x16   :  { %388 = vmatpush.bf16.msra.mxu0 %v731_v40 }
  0x17   :  { %407 = vmatpush.bf16.msra.mxu1 %v739_v41  ;;  %v113_v56 = vld [vmem:[#allocation2] sm:$0xff] }
  0x18   :  { %426 = vmatpush.bf16.msra.mxu2 %v747_v42  ;;  %v114_v58 = vld [vmem:[#allocation2 + $0x8] sm:$0xff] }
  0x19   :  { %555 = vmatpush.bf16.msra.mxu3 %v755_v45  ;;  %v149_v59 = vld [vmem:[#allocation2 + $0x2] sm:$0xff]  ;;  %v150_v62 = vld [vmem:[#allocation2 + $0xa] sm:$0xff]  ;;  %v686_v0 = vpack.c.bf16 %v114_v58, %v113_v56 }
  0x1a   :  { %389 = vmatpush.bf16.msra.mxu0 %v730_v47  ;;  %v692_v2 = vpack.c.bf16 %v150_v62, %v149_v59  ;;  %v115_v10 = vld [vmem:[#allocation2 + $0x10] sm:$0xff]  ;;  %v116_v11 = vld [vmem:[#allocation2 + $0x18] sm:$0xff] }
  0x1b   :  { %408 = vmatpush.bf16.msra.mxu1 %v738_v48  ;;  %v151_v12 = vld [vmem:[#allocation2 + $0x12] sm:$0xff]  ;;  %v152_v13 = vld [vmem:[#allocation2 + $0x1a] sm:$0xff]  ;;  %v689_v16 = vpack.c.bf16 %v116_v11, %v115_v10 }
  0x1c   :  { %427 = vmatpush.bf16.msra.mxu2 %v746_v49  ;;  %v695_v18 = vpack.c.bf16 %v152_v13, %v151_v12 }
  0x1d   :  { %556 = vmatpush.bf16.msra.mxu3 %v754_v52 }
  0x1e   :  { %390 = vmatpush.bf16.msra.mxu0 %v729_v54 }
  0x1f   :  { %409 = vmatpush.bf16.msra.mxu1 %v737_v55 }
  0x20   :  { %428 = vmatpush.bf16.msra.mxu2 %v745_v57 }
  0x21   :  { %557 = vmatpush.bf16.msra.mxu3 %v753_v63  ;;  %687 = vmatmul.msk.bf16.vlgmr.msra.gmra.mxu0 %vm685_vm3, %v686_v0 }
  0x22   :  { %410 = vmatmul.bf16.vlgmr.msra.gmra.mxu1 %v182_v1 }
  0x23   :  { %693 = vmatmul.msk.bf16.vlgmr.msra.gmra.mxu2 %vm691_vm4, %v692_v2 }
  0x24   :  { %558 = vmatmul.bf16.vlgmr.msra.gmra.mxu3 %v480_v3 }
  0x31   :  { %690 = vmatmul.msk.bf16.gmra.mxu0 %vm688_vm7, %v689_v16 }
  0x32   :  { %415 = vmatmul.bf16.gmra.mxu1 %v185_v17 }
  0x33   :  { %696 = vmatmul.msk.bf16.gmra.mxu2 %vm694_vm8, %v695_v18 }
  0x34   :  { %563 = vmatmul.bf16.gmra.mxu3 %v481_v19 }
  0x9e   :  { %v392_v20 = vpop.f32.mrf.mxu0 }
  0x9f   :  { %v411_v21 = vpop.f32.mrf.mxu1  ;;  %v393_v24 = vadd.f32 %v787_v22, %v392_v20 }
  0xa1   :  { %v412_v29 = vadd.f32 %v411_v21, %v393_v24 }
  0xa6   :  { %v430_v23 = vpop.f32.mrf.mxu2  ;;  %v394_v25 = vpop.f32.mrf.mxu0 }
  0xa7   :  { %v413_v26 = vpop.f32.mrf.mxu1  ;;  %v559_v27 = vpop.f32.mrf.mxu3  ;;  %v395_v28 = vadd.f32 %v787_v22, %v394_v25  ;;  %v431_v33 = vadd.f32 %v430_v23, %v412_v29 }
  0xa8   :  { %v560_v34 = vadd.f32 %v788_v30, %v559_v27 }
  0xa9   :  { %v414_v31 = vadd.f32 %v413_v26, %v395_v28  ;;  %v458_v50 = vmul.f32 %v431_v33, %v431_v33 }
  0xae   :  { %v432_v32 = vpop.f32.mrf.mxu2  ;;  %v397_v36 = vpop.f32.mrf.mxu0 }
  0xaf   :  { %v433_v35 = vadd.f32 %v432_v32, %v414_v31  ;;  %v398_v37 = vadd.f32 %v787_v22, %v397_v36  ;;  %v561_v38 = vpop.f32.mrf.mxu3  ;;  %v416_v41 = vpop.f32.mrf.mxu1 }
  0xb0   :  { %v562_v40 = vadd.f32 %v788_v30, %v561_v38 }
  0xb1   :  { %v764_v39 = vpack.c.bf16 %v433_v35, %v431_v33  ;;  %v417_v43 = vadd.f32 %v416_v41, %v398_v37  ;;  %v459_v49 = vmul.f32 %v433_v35, %v433_v35  ;;  %v448_v53 = vadd.f32 %v433_v35, %v431_v33 }
  0xb2   :  { %v774_v42 = vpack.c.bf16 %v562_v40, %v560_v34 }
  0xb3   :  { %765 = vst [vmem:[%s1034_s8] sm:$0xff] %v764_v39   ;;  %v462_v55 = vadd.f32 %v459_v49, %v458_v50 }
  0xb4   :  { %775 = vst [vmem:[%s1035_s9] sm:$0xff] %v774_v42  }
  0xb6   :  { %v435_v44 = vpop.f32.mrf.mxu2  ;;  %v399_v45 = vpop.f32.mrf.mxu0 }
  0xb7   :  { %v436_v46 = vadd.f32 %v435_v44, %v417_v43  ;;  %v564_v47 = vpop.f32.mrf.mxu3  ;;  %v400_v48 = vadd.f32 %v787_v22, %v399_v45  ;;  %v418_v52 = vpop.f32.mrf.mxu1 }
  0xb8   :  { %v565_v58 = vadd.f32 %v788_v30, %v564_v47 }
  0xb9   :  { %v460_v51 = vmul.f32 %v436_v46, %v436_v46  ;;  %v419_v54 = vadd.f32 %v418_v52, %v400_v48  ;;  %v449_v57 = vadd.f32 %v448_v53, %v436_v46 }
  0xbb   :  { %v463_v60 = vadd.f32 %v462_v55, %v460_v51 }
  0xbe   :  { %v437_v56 = vpop.f32.mrf.mxu2 }
  0xbf   :  { %v438_v59 = vadd.f32 %v437_v56, %v419_v54  ;;  %v566_v61 = vpop.f32.mrf.mxu3 }
  0xc0   :  { %v567_v1 = vadd.f32 %v788_v30, %v566_v61 }
  0xc1   :  { %v769_v62 = vpack.c.bf16 %v438_v59, %v436_v46  ;;  %v450_v63 = vadd.f32 %v449_v57, %v438_v59  ;;  %v461_v0 = vmul.f32 %v438_v59, %v438_v59 }
  0xc2   :  { %v779_v4 = vpack.c.bf16 %v567_v1, %v565_v58 }
  0xc3   :  { %781 = vst [vmem:[%s1034_s8 + $0x8] sm:$0xff] %v769_v62   ;;  %v451_v2 = vrot.slane %v450_v63, 4  ;;  %v464_v3 = vadd.f32 %v463_v60, %v461_v0 }
  0xc4   :  { %782 = vst [vmem:[%s1035_s9 + $0x8] sm:$0xff] %v779_v4  }
  0xc5   :  { %v452_v5 = vadd.f32 %v451_v2, %v450_v63  ;;  %v465_v6 = vrot.slane %v464_v3, 4 }
  0xc7   :  { %v453_v7 = vrot.slane %v452_v5, 2  ;;  %v466_v8 = vadd.f32 %v465_v6, %v464_v3 }
  0xc9   :  { %v454_v9 = vadd.f32 %v453_v7, %v452_v5  ;;  %v467_v10 = vrot.slane %v466_v8, 2 }
  0xcb   :  { %v455_v11 = vrot.slane %v454_v9, 1  ;;  %v468_v12 = vadd.f32 %v467_v10, %v466_v8 }
  0xcd   :  { %v456_v13 = vadd.f32 %v455_v11, %v454_v9  ;;  %v469_v14 = vrot.slane %v468_v12, 1 }
  0xcf   :  { %457 = vst [vmem:[%s1036_s10] sm:$0x1] %v456_v13  ;;  %v470_v15 = vadd.f32 %v469_v14, %v468_v12 }
  0xd1   :  { %471 = vst [vmem:[%s1036_s10 + $0x1] sm:$0x1] %v470_v15 }

// kernel: resdown_forward.5
= control target key start
LH: loop header
LB: loop body
LE: loop exit
PB: predicated region body
PF: predicated region fallthrough
CT: control target
= control target key end

     0   :  { %v57_v8 = vlaneseq  ;;  %vm662_vm3 = vmmov 1   ;;  %s831_s3 = inlined_call_operand.vmem [shape: bf16[384,128], index: 3, kind: input, shape index: {}]   ;;  %s832_s0 = inlined_call_operand.vmem [shape: bf16[32,128], index: 0, kind: input, shape index: {}]   ;;  %s833_s1 = inlined_call_operand.vmem [shape: f32[1,128], index: 1, kind: input, shape index: {}]   ;;  %s834_s2 = inlined_call_operand.vmem [shape: f32[1,128], index: 2, kind: input, shape index: {}]   ;;  %s835_s4 = inlined_call_operand.vmem [shape: f32[1,128], index: 4, kind: input, shape index: {}]   ;;  %s836_s5 = inlined_call_operand.vmem [shape: bf16[32,128], index: 5, kind: input, shape index: {}]   ;;  %s837_s6 = inlined_call_operand.vmem [shape: bf16[32,128], index: 6, kind: output, shape index: {0}]   ;;  %s838_s7 = inlined_call_operand.vmem [shape: f32[1,2,128], index: 7, kind: output, shape index: {1}]  }
   0x1   :  { %v604_v0 = vld [vmem:[%s831_s3 + $0x38] sm:$0xff]  ;;  %v603_v3 = vld [vmem:[%s831_s3 + $0x30] sm:$0xff]  ;;  %v602_v6 = vld [vmem:[%s831_s3 + $0x28] sm:$0xff] }
   0x2   :  { %v612_v1 = vld [vmem:[%s831_s3 + $0x78] sm:$0xff]  ;;  %380 = vmatpush.bf16.msra.mxu0 %v604_v0  ;;  %v611_v4 = vld [vmem:[%s831_s3 + $0x70] sm:$0xff]  ;;  %650 = vmatpush.bf16.msra.mxu3 %v604_v0  ;;  %v610_v7 = vld [vmem:[%s831_s3 + $0x68] sm:$0xff]  ;;  %v745_v17 = vshrl.u32 %v57_v8, 7 }
   0x3   :  { %v620_v2 = vld [vmem:[%s831_s3 + $0xb8] sm:$0xff]  ;;  %399 = vmatpush.bf16.msra.mxu1 %v612_v1  ;;  %v619_v5 = vld [vmem:[%s831_s3 + $0xb0] sm:$0xff]  ;;  %v618_v9 = vld [vmem:[%s831_s3 + $0xa8] sm:$0xff] }
   0x4   :  { %418 = vmatpush.bf16.msra.mxu2 %v620_v2  ;;  %v622_v10 = vld [vmem:[%s832_s0] sm:$0xff]   ;;  %v647_v18 = vld [vmem:[%s832_s0 + $0x8] sm:$0xff]   ;;  %v600_v28 = vld [vmem:[%s831_s3 + $0x18] sm:$0xff]  ;;  %v59_v30 = vadd.s32 8, %v745_v17  ;;  %v60_v36 = vadd.s32 16, %v745_v17  ;;  %v66_v41 = vand.u32 15, %v745_v17 }
   0x5   :  { %v659_v11 = vld [vmem:[%s833_s1] ss:$0 sm:$0xff]  ;;  %v623_v13 = vunpack.c.l.bf16 %v622_v10  ;;  %v624_v14 = vunpack.c.h.bf16 %v622_v10  ;;  %v627_v22 = vunpack.c.l.bf16 %v647_v18  ;;  %v628_v23 = vunpack.c.h.bf16 %v647_v18  ;;  %v608_v29 = vld [vmem:[%s831_s3 + $0x58] sm:$0xff]  ;;  %v599_v39 = vld [vmem:[%s831_s3 + $0x10] sm:$0xff] }
   0x6   :  { %381 = vmatpush.bf16.msra.mxu0 %v603_v3  ;;  %651 = vmatpush.bf16.msra.mxu3 %v603_v3  ;;  %v601_v12 = vld [vmem:[%s831_s3 + $0x20] sm:$0xff]  ;;  %v616_v31 = vld [vmem:[%s831_s3 + $0x98] sm:$0xff]  ;;  %v607_v40 = vld [vmem:[%s831_s3 + $0x50] sm:$0xff]  ;;  %v73_v43 = vand.u32 15, %v59_v30  ;;  %v80_v44 = vand.u32 15, %v60_v36  ;;  %v114_v47 = vadd.s32 4294967295, %v66_v41 }
   0x7   :  { %400 = vmatpush.bf16.msra.mxu1 %v611_v4  ;;  %v660_v15 = vld [vmem:[%s834_s2] ss:$0 sm:$0xff]  ;;  %v37_v20 = vmul.f32 %v659_v11, %v623_v13  ;;  %v38_v21 = vmul.f32 %v659_v11, %v624_v14  ;;  %v39_v26 = vmul.f32 %v659_v11, %v627_v22  ;;  %v40_v27 = vmul.f32 %v659_v11, %v628_v23  ;;  %v615_v42 = vld [vmem:[%s831_s3 + $0x90] sm:$0xff]  ;;  %v598_v45 = vld [vmem:[%s831_s3 + $0x8] sm:$0xff] }
   0x8   :  { %419 = vmatpush.bf16.msra.mxu2 %v619_v5  ;;  %v609_v16 = vld [vmem:[%s831_s3 + $0x60] sm:$0xff]  ;;  %v606_v46 = vld [vmem:[%s831_s3 + $0x48] sm:$0xff]  ;;  %v151_v49 = vadd.s32 1, %v73_v43  ;;  %v116_v50 = vadd.s32 4294967295, %v80_v44  ;;  %vm118_vm0 = vcmp.ge.s32.totalorder %v114_v47, 0  ;;  %v61_v0 = vadd.s32 24, %v745_v17 }
   0x9   :  { %v617_v19 = vld [vmem:[%s831_s3 + $0xa0] sm:$0xff]  ;;  %v753_v24 = vadd.f32 %v660_v15, %v37_v20  ;;  %v46_v25 = vadd.f32 %v660_v15, %v38_v21  ;;  %v766_v34 = vadd.f32 %v660_v15, %v39_v26  ;;  %v768_v35 = vadd.f32 %v660_v15, %v40_v27  ;;  %v614_v48 = vld [vmem:[%s831_s3 + $0x88] sm:$0xff]  ;;  %vm585_vm4 = vmpackc.low %vm662_vm3, %vm118_vm0 }
   0xa   :  { %382 = vmatpush.bf16.msra.mxu0 %v602_v6  ;;  %652 = vmatpush.bf16.msra.mxu3 %v602_v6  ;;  %v597_v51 = vld [vmem:[%s831_s3] sm:$0xff]  ;;  %vm159_vm1 = vcmp.lt.s32.totalorder %v151_v49, 16  ;;  %vm120_vm2 = vcmp.ge.s32.totalorder %v116_v50, 0  ;;  %v87_v1 = vand.u32 15, %v61_v0  ;;  %v648_v30 = vld [vmem:[%s836_s5 + $0x8] sm:$0xff]  }
   0xb   :  { %401 = vmatpush.bf16.msra.mxu1 %v610_v7  ;;  %v49_v32 = vmax.f32 %v753_v24, 0.0  ;;  %v50_v33 = vmax.f32 %v46_v25, 0.0  ;;  %v51_v37 = vmax.f32 %v766_v34, 0.0  ;;  %v52_v38 = vmax.f32 %v768_v35, 0.0  ;;  %v605_v52 = vld [vmem:[%s831_s3 + $0x40] sm:$0xff]  ;;  %vm591_vm5 = vmpackc.low %vm159_vm1, %vm662_vm3 }
   0xc   :  { %420 = vmatpush.bf16.msra.mxu2 %v618_v9  ;;  %v613_v53 = vld [vmem:[%s831_s3 + $0x80] sm:$0xff]  ;;  %vm588_vm6 = vmpackc.low %vm662_vm3, %vm120_vm2  ;;  %v153_v2 = vadd.s32 1, %v87_v1 }
   0xd   :  { %53 = vst [vmem:[#allocation2 + $0x1] sm:$0xff] %v49_v32  ;;  %v179_v61 = vpack.c.bf16 %v50_v33, %v49_v32  ;;  %v182_v5 = vpack.c.bf16 %v52_v38, %v51_v37  ;;  %v661_v9 = vld [vmem:[%s835_s4] ss:$0 sm:$0xff] }
   0xe   :  { %383 = vmatpush.bf16.msra.mxu0 %v601_v12  ;;  %653 = vmatpush.bf16.msra.mxu3 %v601_v12  ;;  %54 = vst [vmem:[#allocation2 + $0x9] sm:$0xff] %v50_v33  ;;  %vm161_vm7 = vcmp.lt.s32.totalorder %v153_v2, 16  ;;  %v635_v33 = vunpack.c.l.bf16 %v648_v30 }
   0xf   :  { %402 = vmatpush.bf16.msra.mxu1 %v609_v16  ;;  %55 = vst [vmem:[#allocation2 + $0x11] sm:$0xff] %v51_v37  ;;  %vm594_vm8 = vmpackc.low %vm161_vm7, %vm662_vm3  ;;  %v630_v16 = vld [vmem:[%s836_s5] sm:$0xff]  }
  0x10   :  { %421 = vmatpush.bf16.msra.mxu2 %v617_v19  ;;  %56 = vst [vmem:[#allocation2 + $0x19] sm:$0xff] %v52_v38  ;;  %v631_v18 = vunpack.c.l.bf16 %v630_v16  ;;  %v632_v20 = vunpack.c.h.bf16 %v630_v16 }
  0x12   :  { %384 = vmatpush.bf16.msra.mxu0 %v600_v28  ;;  %654 = vmatpush.bf16.msra.mxu3 %v600_v28 }
  0x13   :  { %403 = vmatpush.bf16.msra.mxu1 %v608_v29 }
  0x14   :  { %422 = vmatpush.bf16.msra.mxu2 %v616_v31  ;;  %v110_v54 = vld [vmem:[#allocation2] sm:$0xff] }
  0x15   :  { %v111_v55 = vld [vmem:[#allocation2 + $0x8] sm:$0xff] }
  0x16   :  { %385 = vmatpush.bf16.msra.mxu0 %v599_v39  ;;  %655 = vmatpush.bf16.msra.mxu3 %v599_v39  ;;  %v146_v56 = vld [vmem:[#allocation2 + $0x2] sm:$0xff]  ;;  %v147_v57 = vld [vmem:[#allocation2 + $0xa] sm:$0xff]  ;;  %v586_v60 = vpack.c.bf16 %v111_v55, %v110_v54 }
  0x17   :  { %404 = vmatpush.bf16.msra.mxu1 %v607_v40  ;;  %v112_v58 = vld [vmem:[#allocation2 + $0x10] sm:$0xff]  ;;  %v113_v59 = vld [vmem:[#allocation2 + $0x18] sm:$0xff]  ;;  %v592_v62 = vpack.c.bf16 %v147_v57, %v146_v56  ;;  %v636_v40 = vunpack.c.h.bf16 %v648_v30 }
  0x18   :  { %423 = vmatpush.bf16.msra.mxu2 %v615_v42  ;;  %v589_v63 = vpack.c.bf16 %v113_v59, %v112_v58  ;;  %v148_v3 = vld [vmem:[#allocation2 + $0x12] sm:$0xff]  ;;  %v149_v4 = vld [vmem:[#allocation2 + $0x1a] sm:$0xff] }
  0x19   :  { %v595_v6 = vpack.c.bf16 %v149_v4, %v148_v3 }
  0x1a   :  { %386 = vmatpush.bf16.msra.mxu0 %v598_v45  ;;  %656 = vmatpush.bf16.msra.mxu3 %v598_v45 }
  0x1b   :  { %405 = vmatpush.bf16.msra.mxu1 %v606_v46 }
  0x1c   :  { %424 = vmatpush.bf16.msra.mxu2 %v614_v48 }
  0x1e   :  { %387 = vmatpush.bf16.msra.mxu0 %v597_v51  ;;  %657 = vmatpush.bf16.msra.mxu3 %v597_v51 }
  0x1f   :  { %406 = vmatpush.bf16.msra.mxu1 %v605_v52 }
  0x20   :  { %425 = vmatpush.bf16.msra.mxu2 %v613_v53 }
  0x21   :  { %587 = vmatmul.msk.bf16.vlgmr.msra.gmra.mxu0 %vm585_vm4, %v586_v60  ;;  %590 = vmatmul.msk.bf16.vlgmr.msra.gmra.mxu3 %vm588_vm6, %v589_v63 }
  0x22   :  { %407 = vmatmul.bf16.vlgmr.msra.gmra.mxu1 %v179_v61 }
  0x23   :  { %593 = vmatmul.msk.bf16.vlgmr.msra.gmra.mxu2 %vm591_vm5, %v592_v62 }
  0x32   :  { %412 = vmatmul.bf16.gmra.mxu1 %v182_v5 }
  0x33   :  { %596 = vmatmul.msk.bf16.gmra.mxu2 %vm594_vm8, %v595_v6 }
  0x9e   :  { %v389_v7 = vpop.f32.mrf.mxu0 }
  0x9f   :  { %v408_v8 = vpop.f32.mrf.mxu1  ;;  %v390_v10 = vadd.f32 %v661_v9, %v389_v7 }
  0xa1   :  { %v409_v14 = vadd.f32 %v408_v8, %v390_v10 }
  0xa4   :  { %v394_v21 = vpop.f32.mrf.mxu3 }
  0xa5   :  { %v395_v23 = vadd.f32 %v661_v9, %v394_v21 }
  0xa6   :  { %v427_v11 = vpop.f32.mrf.mxu2  ;;  %v391_v12 = vpop.f32.mrf.mxu0 }
  0xa7   :  { %v410_v13 = vpop.f32.mrf.mxu1  ;;  %v392_v15 = vadd.f32 %v661_v9, %v391_v12  ;;  %v428_v17 = vadd.f32 %v427_v11, %v409_v14 }
  0xa9   :  { %v411_v19 = vadd.f32 %v410_v13, %v392_v15  ;;  %v445_v26 = vadd.f32 %v631_v18, %v428_v17 }
  0xab   :  { %v467_v42 = vmul.f32 %v445_v26, %v445_v26 }
  0xac   :  { %v396_v34 = vpop.f32.mrf.mxu3 }
  0xad   :  { %v397_v36 = vadd.f32 %v661_v9, %v396_v34 }
  0xae   :  { %v429_v22 = vpop.f32.mrf.mxu2 }
  0xaf   :  { %v430_v24 = vadd.f32 %v429_v22, %v411_v19  ;;  %v413_v25 = vpop.f32.mrf.mxu1 }
  0xb0   :  { %v414_v29 = vadd.f32 %v413_v25, %v395_v23 }
  0xb1   :  { %v446_v27 = vadd.f32 %v632_v20, %v430_v24 }
  0xb3   :  { %v640_v28 = vpack.c.bf16 %v446_v27, %v445_v26  ;;  %v468_v38 = vmul.f32 %v446_v27, %v446_v27  ;;  %v457_v43 = vadd.f32 %v446_v27, %v445_v26 }
  0xb5   :  { %641 = vst [vmem:[%s837_s6] sm:$0xff] %v640_v28   ;;  %v471_v46 = vadd.f32 %v468_v38, %v467_v42 }
  0xb6   :  { %v432_v31 = vpop.f32.mrf.mxu2 }
  0xb7   :  { %v433_v32 = vadd.f32 %v432_v31, %v414_v29  ;;  %v415_v35 = vpop.f32.mrf.mxu1 }
  0xb8   :  { %v416_v39 = vadd.f32 %v415_v35, %v397_v36 }
  0xb9   :  { %v447_v37 = vadd.f32 %v635_v33, %v433_v32 }
  0xbb   :  { %v469_v44 = vmul.f32 %v447_v37, %v447_v37  ;;  %v458_v47 = vadd.f32 %v457_v43, %v447_v37 }
  0xbd   :  { %v472_v49 = vadd.f32 %v471_v46, %v469_v44 }
  0xbe   :  { %v434_v41 = vpop.f32.mrf.mxu2 }
  0xbf   :  { %v435_v45 = vadd.f32 %v434_v41, %v416_v39 }
  0xc1   :  { %v448_v48 = vadd.f32 %v636_v40, %v435_v45 }
  0xc3   :  { %v645_v50 = vpack.c.bf16 %v448_v48, %v447_v37  ;;  %v459_v51 = vadd.f32 %v458_v47, %v448_v48  ;;  %v470_v52 = vmul.f32 %v448_v48, %v448_v48 }
  0xc5   :  { %649 = vst [vmem:[%s837_s6 + $0x8] sm:$0xff] %v645_v50   ;;  %v460_v53 = vrot.slane %v459_v51, 4  ;;  %v473_v54 = vadd.f32 %v472_v49, %v470_v52 }
  0xc7   :  { %v461_v55 = vadd.f32 %v460_v53, %v459_v51  ;;  %v474_v56 = vrot.slane %v473_v54, 4 }
  0xc9   :  { %v462_v57 = vrot.slane %v461_v55, 2  ;;  %v475_v58 = vadd.f32 %v474_v56, %v473_v54 }
  0xcb   :  { %v463_v59 = vadd.f32 %v462_v57, %v461_v55  ;;  %v476_v60 = vrot.slane %v475_v58, 2 }
  0xcd   :  { %v464_v61 = vrot.slane %v463_v59, 1  ;;  %v477_v62 = vadd.f32 %v476_v60, %v475_v58 }
  0xcf   :  { %v465_v63 = vadd.f32 %v464_v61, %v463_v59  ;;  %v478_v0 = vrot.slane %v477_v62, 1 }
  0xd1   :  { %466 = vst [vmem:[%s838_s7] sm:$0x1] %v465_v63  ;;  %v479_v1 = vadd.f32 %v478_v0, %v477_v62 }
  0xd3   :  { %480 = vst [vmem:[%s838_s7 + $0x1] sm:$0x1] %v479_v1 }

// kernel: resdown_forward.6
= control target key start
LH: loop header
LB: loop body
LE: loop exit
PB: predicated region body
PF: predicated region fallthrough
CT: control target
= control target key end

     0   :  { %v54_v8 = vlaneseq  ;;  %vm638_vm3 = vmmov 1   ;;  %s796_s3 = inlined_call_operand.vmem [shape: bf16[384,128], index: 3, kind: input, shape index: {}]   ;;  %s797_s0 = inlined_call_operand.vmem [shape: bf16[32,128], index: 0, kind: input, shape index: {}]   ;;  %s798_s1 = inlined_call_operand.vmem [shape: f32[1,128], index: 1, kind: input, shape index: {}]   ;;  %s799_s2 = inlined_call_operand.vmem [shape: f32[1,128], index: 2, kind: input, shape index: {}]   ;;  %s800_s4 = inlined_call_operand.vmem [shape: f32[1,128], index: 4, kind: input, shape index: {}]   ;;  %s801_s5 = inlined_call_operand.vmem [shape: bf16[32,128], index: 5, kind: output, shape index: {0}]   ;;  %s802_s6 = inlined_call_operand.vmem [shape: f32[1,2,128], index: 6, kind: output, shape index: {1}]  }
   0x1   :  { %v589_v0 = vld [vmem:[%s796_s3 + $0x38] sm:$0xff]  ;;  %v588_v3 = vld [vmem:[%s796_s3 + $0x30] sm:$0xff]  ;;  %v587_v6 = vld [vmem:[%s796_s3 + $0x28] sm:$0xff] }
   0x2   :  { %v597_v1 = vld [vmem:[%s796_s3 + $0x78] sm:$0xff]  ;;  %377 = vmatpush.bf16.msra.mxu0 %v589_v0  ;;  %v596_v4 = vld [vmem:[%s796_s3 + $0x70] sm:$0xff]  ;;  %626 = vmatpush.bf16.msra.mxu3 %v589_v0  ;;  %v595_v7 = vld [vmem:[%s796_s3 + $0x68] sm:$0xff]  ;;  %v716_v17 = vshrl.u32 %v54_v8, 7 }
   0x3   :  { %v605_v2 = vld [vmem:[%s796_s3 + $0xb8] sm:$0xff]  ;;  %396 = vmatpush.bf16.msra.mxu1 %v597_v1  ;;  %v604_v5 = vld [vmem:[%s796_s3 + $0xb0] sm:$0xff]  ;;  %v603_v9 = vld [vmem:[%s796_s3 + $0xa8] sm:$0xff] }
   0x4   :  { %415 = vmatpush.bf16.msra.mxu2 %v605_v2  ;;  %v607_v10 = vld [vmem:[%s797_s0] sm:$0xff]   ;;  %v624_v18 = vld [vmem:[%s797_s0 + $0x8] sm:$0xff]   ;;  %v585_v28 = vld [vmem:[%s796_s3 + $0x18] sm:$0xff]  ;;  %v56_v30 = vadd.s32 8, %v716_v17  ;;  %v57_v36 = vadd.s32 16, %v716_v17  ;;  %v63_v41 = vand.u32 15, %v716_v17 }
   0x5   :  { %v635_v11 = vld [vmem:[%s798_s1] ss:$0 sm:$0xff]  ;;  %v608_v13 = vunpack.c.l.bf16 %v607_v10  ;;  %v609_v14 = vunpack.c.h.bf16 %v607_v10  ;;  %v612_v22 = vunpack.c.l.bf16 %v624_v18  ;;  %v613_v23 = vunpack.c.h.bf16 %v624_v18  ;;  %v593_v29 = vld [vmem:[%s796_s3 + $0x58] sm:$0xff]  ;;  %v584_v39 = vld [vmem:[%s796_s3 + $0x10] sm:$0xff] }
   0x6   :  { %378 = vmatpush.bf16.msra.mxu0 %v588_v3  ;;  %627 = vmatpush.bf16.msra.mxu3 %v588_v3  ;;  %v586_v12 = vld [vmem:[%s796_s3 + $0x20] sm:$0xff]  ;;  %v601_v31 = vld [vmem:[%s796_s3 + $0x98] sm:$0xff]  ;;  %v592_v40 = vld [vmem:[%s796_s3 + $0x50] sm:$0xff]  ;;  %v70_v43 = vand.u32 15, %v56_v30  ;;  %v77_v44 = vand.u32 15, %v57_v36  ;;  %v111_v47 = vadd.s32 4294967295, %v63_v41 }
   0x7   :  { %397 = vmatpush.bf16.msra.mxu1 %v596_v4  ;;  %v636_v15 = vld [vmem:[%s799_s2] ss:$0 sm:$0xff]  ;;  %v34_v20 = vmul.f32 %v635_v11, %v608_v13  ;;  %v35_v21 = vmul.f32 %v635_v11, %v609_v14  ;;  %v36_v26 = vmul.f32 %v635_v11, %v612_v22  ;;  %v37_v27 = vmul.f32 %v635_v11, %v613_v23  ;;  %v600_v42 = vld [vmem:[%s796_s3 + $0x90] sm:$0xff]  ;;  %v583_v45 = vld [vmem:[%s796_s3 + $0x8] sm:$0xff] }
   0x8   :  { %416 = vmatpush.bf16.msra.mxu2 %v604_v5  ;;  %v594_v16 = vld [vmem:[%s796_s3 + $0x60] sm:$0xff]  ;;  %v591_v46 = vld [vmem:[%s796_s3 + $0x48] sm:$0xff]  ;;  %v148_v49 = vadd.s32 1, %v70_v43  ;;  %v113_v50 = vadd.s32 4294967295, %v77_v44  ;;  %vm115_vm0 = vcmp.ge.s32.totalorder %v111_v47, 0  ;;  %v58_v0 = vadd.s32 24, %v716_v17 }
   0x9   :  { %v602_v19 = vld [vmem:[%s796_s3 + $0xa0] sm:$0xff]  ;;  %v724_v24 = vadd.f32 %v636_v15, %v34_v20  ;;  %v43_v25 = vadd.f32 %v636_v15, %v35_v21  ;;  %v737_v34 = vadd.f32 %v636_v15, %v36_v26  ;;  %v739_v35 = vadd.f32 %v636_v15, %v37_v27  ;;  %v599_v48 = vld [vmem:[%s796_s3 + $0x88] sm:$0xff]  ;;  %vm570_vm4 = vmpackc.low %vm638_vm3, %vm115_vm0 }
   0xa   :  { %379 = vmatpush.bf16.msra.mxu0 %v587_v6  ;;  %628 = vmatpush.bf16.msra.mxu3 %v587_v6  ;;  %v582_v51 = vld [vmem:[%s796_s3] sm:$0xff]  ;;  %vm156_vm1 = vcmp.lt.s32.totalorder %v148_v49, 16  ;;  %vm117_vm2 = vcmp.ge.s32.totalorder %v113_v50, 0  ;;  %v84_v1 = vand.u32 15, %v58_v0 }
   0xb   :  { %398 = vmatpush.bf16.msra.mxu1 %v595_v7  ;;  %v46_v32 = vmax.f32 %v724_v24, 0.0  ;;  %v47_v33 = vmax.f32 %v43_v25, 0.0  ;;  %v48_v37 = vmax.f32 %v737_v34, 0.0  ;;  %v49_v38 = vmax.f32 %v739_v35, 0.0  ;;  %v590_v52 = vld [vmem:[%s796_s3 + $0x40] sm:$0xff]  ;;  %vm576_vm5 = vmpackc.low %vm156_vm1, %vm638_vm3 }
   0xc   :  { %417 = vmatpush.bf16.msra.mxu2 %v603_v9  ;;  %v598_v53 = vld [vmem:[%s796_s3 + $0x80] sm:$0xff]  ;;  %vm573_vm6 = vmpackc.low %vm638_vm3, %vm117_vm2  ;;  %v150_v2 = vadd.s32 1, %v84_v1 }
   0xd   :  { %50 = vst [vmem:[#allocation2 + $0x1] sm:$0xff] %v46_v32  ;;  %v176_v61 = vpack.c.bf16 %v47_v33, %v46_v32  ;;  %v179_v5 = vpack.c.bf16 %v49_v38, %v48_v37  ;;  %v637_v9 = vld [vmem:[%s800_s4] ss:$0 sm:$0xff] }
   0xe   :  { %380 = vmatpush.bf16.msra.mxu0 %v586_v12  ;;  %629 = vmatpush.bf16.msra.mxu3 %v586_v12  ;;  %51 = vst [vmem:[#allocation2 + $0x9] sm:$0xff] %v47_v33  ;;  %vm158_vm7 = vcmp.lt.s32.totalorder %v150_v2, 16 }
   0xf   :  { %399 = vmatpush.bf16.msra.mxu1 %v594_v16  ;;  %52 = vst [vmem:[#allocation2 + $0x11] sm:$0xff] %v48_v37  ;;  %vm579_vm8 = vmpackc.low %vm158_vm7, %vm638_vm3 }
  0x10   :  { %418 = vmatpush.bf16.msra.mxu2 %v602_v19  ;;  %53 = vst [vmem:[#allocation2 + $0x19] sm:$0xff] %v49_v38 }
  0x12   :  { %381 = vmatpush.bf16.msra.mxu0 %v585_v28  ;;  %630 = vmatpush.bf16.msra.mxu3 %v585_v28 }
  0x13   :  { %400 = vmatpush.bf16.msra.mxu1 %v593_v29 }
  0x14   :  { %419 = vmatpush.bf16.msra.mxu2 %v601_v31  ;;  %v107_v54 = vld [vmem:[#allocation2] sm:$0xff] }
  0x15   :  { %v108_v55 = vld [vmem:[#allocation2 + $0x8] sm:$0xff] }
  0x16   :  { %382 = vmatpush.bf16.msra.mxu0 %v584_v39  ;;  %631 = vmatpush.bf16.msra.mxu3 %v584_v39  ;;  %v143_v56 = vld [vmem:[#allocation2 + $0x2] sm:$0xff]  ;;  %v144_v57 = vld [vmem:[#allocation2 + $0xa] sm:$0xff]  ;;  %v571_v60 = vpack.c.bf16 %v108_v55, %v107_v54 }
  0x17   :  { %401 = vmatpush.bf16.msra.mxu1 %v592_v40  ;;  %v109_v58 = vld [vmem:[#allocation2 + $0x10] sm:$0xff]  ;;  %v110_v59 = vld [vmem:[#allocation2 + $0x18] sm:$0xff]  ;;  %v577_v62 = vpack.c.bf16 %v144_v57, %v143_v56 }
  0x18   :  { %420 = vmatpush.bf16.msra.mxu2 %v600_v42  ;;  %v574_v63 = vpack.c.bf16 %v110_v59, %v109_v58  ;;  %v145_v3 = vld [vmem:[#allocation2 + $0x12] sm:$0xff]  ;;  %v146_v4 = vld [vmem:[#allocation2 + $0x1a] sm:$0xff] }
  0x19   :  { %v580_v6 = vpack.c.bf16 %v146_v4, %v145_v3 }
  0x1a   :  { %383 = vmatpush.bf16.msra.mxu0 %v583_v45  ;;  %632 = vmatpush.bf16.msra.mxu3 %v583_v45 }
  0x1b   :  { %402 = vmatpush.bf16.msra.mxu1 %v591_v46 }
  0x1c   :  { %421 = vmatpush.bf16.msra.mxu2 %v599_v48 }
  0x1e   :  { %384 = vmatpush.bf16.msra.mxu0 %v582_v51  ;;  %633 = vmatpush.bf16.msra.mxu3 %v582_v51 }
  0x1f   :  { %403 = vmatpush.bf16.msra.mxu1 %v590_v52 }
  0x20   :  { %422 = vmatpush.bf16.msra.mxu2 %v598_v53 }
  0x21   :  { %572 = vmatmul.msk.bf16.vlgmr.msra.gmra.mxu0 %vm570_vm4, %v571_v60  ;;  %575 = vmatmul.msk.bf16.vlgmr.msra.gmra.mxu3 %vm573_vm6, %v574_v63 }
  0x22   :  { %404 = vmatmul.bf16.vlgmr.msra.gmra.mxu1 %v176_v61 }
  0x23   :  { %578 = vmatmul.msk.bf16.vlgmr.msra.gmra.mxu2 %vm576_vm5, %v577_v62 }
  0x32   :  { %409 = vmatmul.bf16.gmra.mxu1 %v179_v5 }
  0x33   :  { %581 = vmatmul.msk.bf16.gmra.mxu2 %vm579_vm8, %v580_v6 }
  0x9e   :  { %v386_v7 = vpop.f32.mrf.mxu0 }
  0x9f   :  { %v405_v8 = vpop.f32.mrf.mxu1  ;;  %v387_v11 = vadd.f32 %v637_v9, %v386_v7 }
  0xa1   :  { %v406_v15 = vadd.f32 %v405_v8, %v387_v11 }
  0xa4   :  { %v391_v17 = vpop.f32.mrf.mxu3 }
  0xa5   :  { %v392_v22 = vadd.f32 %v637_v9, %v391_v17 }
  0xa6   :  { %v424_v10 = vpop.f32.mrf.mxu2  ;;  %v388_v12 = vpop.f32.mrf.mxu0 }
  0xa7   :  { %v407_v13 = vpop.f32.mrf.mxu1  ;;  %v389_v14 = vadd.f32 %v637_v9, %v388_v12  ;;  %v425_v19 = vadd.f32 %v424_v10, %v406_v15 }
  0xa9   :  { %v408_v16 = vadd.f32 %v407_v13, %v389_v14  ;;  %v452_v31 = vmul.f32 %v425_v19, %v425_v19 }
  0xac   :  { %v393_v26 = vpop.f32.mrf.mxu3 }
  0xad   :  { %v394_v30 = vadd.f32 %v637_v9, %v393_v26 }
  0xae   :  { %v426_v18 = vpop.f32.mrf.mxu2 }
  0xaf   :  { %v427_v20 = vadd.f32 %v426_v18, %v408_v16  ;;  %v410_v21 = vpop.f32.mrf.mxu1 }
  0xb0   :  { %v411_v24 = vadd.f32 %v410_v21, %v392_v22 }
  0xb1   :  { %v617_v23 = vpack.c.bf16 %v427_v20, %v425_v19  ;;  %v453_v29 = vmul.f32 %v427_v20, %v427_v20  ;;  %v442_v32 = vadd.f32 %v427_v20, %v425_v19 }
  0xb3   :  { %618 = vst [vmem:[%s801_s5] sm:$0xff] %v617_v23   ;;  %v456_v36 = vadd.f32 %v453_v29, %v452_v31 }
  0xb6   :  { %v429_v25 = vpop.f32.mrf.mxu2 }
  0xb7   :  { %v430_v27 = vadd.f32 %v429_v25, %v411_v24  ;;  %v412_v28 = vpop.f32.mrf.mxu1 }
  0xb8   :  { %v413_v34 = vadd.f32 %v412_v28, %v394_v30 }
  0xb9   :  { %v454_v33 = vmul.f32 %v430_v27, %v430_v27  ;;  %v443_v37 = vadd.f32 %v442_v32, %v430_v27 }
  0xbb   :  { %v457_v39 = vadd.f32 %v456_v36, %v454_v33 }
  0xbe   :  { %v431_v35 = vpop.f32.mrf.mxu2 }
  0xbf   :  { %v432_v38 = vadd.f32 %v431_v35, %v413_v34 }
  0xc1   :  { %v622_v40 = vpack.c.bf16 %v432_v38, %v430_v27  ;;  %v444_v41 = vadd.f32 %v443_v37, %v432_v38  ;;  %v455_v42 = vmul.f32 %v432_v38, %v432_v38 }
  0xc3   :  { %625 = vst [vmem:[%s801_s5 + $0x8] sm:$0xff] %v622_v40   ;;  %v445_v43 = vrot.slane %v444_v41, 4  ;;  %v458_v44 = vadd.f32 %v457_v39, %v455_v42 }
  0xc5   :  { %v446_v45 = vadd.f32 %v445_v43, %v444_v41  ;;  %v459_v46 = vrot.slane %v458_v44, 4 }
  0xc7   :  { %v447_v47 = vrot.slane %v446_v45, 2  ;;  %v460_v48 = vadd.f32 %v459_v46, %v458_v44 }
  0xc9   :  { %v448_v49 = vadd.f32 %v447_v47, %v446_v45  ;;  %v461_v50 = vrot.slane %v460_v48, 2 }
  0xcb   :  { %v449_v51 = vrot.slane %v448_v49, 1  ;;  %v462_v52 = vadd.f32 %v461_v50, %v460_v48 }
  0xcd   :  { %v450_v53 = vadd.f32 %v449_v51, %v448_v49  ;;  %v463_v54 = vrot.slane %v462_v52, 1 }
  0xcf   :  { %451 = vst [vmem:[%s802_s6] sm:$0x1] %v450_v53  ;;  %v464_v55 = vadd.f32 %v463_v54, %v462_v52 }
  0xd1   :  { %465 = vst [vmem:[%s802_s6 + $0x1] sm:$0x1] %v464_v55 }

// kernel: resdown_forward.7
= control target key start
LH: loop header
LB: loop body
LE: loop exit
PB: predicated region body
PF: predicated region fallthrough
CT: control target
= control target key end

     0   :  { %v55_v8 = vlaneseq  ;;  %vm617_vm3 = vmmov 1   ;;  %s781_s3 = inlined_call_operand.vmem [shape: bf16[384,128], index: 3, kind: input, shape index: {}]   ;;  %s782_s0 = inlined_call_operand.vmem [shape: bf16[32,128], index: 0, kind: input, shape index: {}]   ;;  %s783_s1 = inlined_call_operand.vmem [shape: f32[1,128], index: 1, kind: input, shape index: {}]   ;;  %s784_s2 = inlined_call_operand.vmem [shape: f32[1,128], index: 2, kind: input, shape index: {}]   ;;  %s785_s4 = inlined_call_operand.vmem [shape: f32[1,128], index: 4, kind: input, shape index: {}]   ;;  %s786_s5 = inlined_call_operand.vmem [shape: bf16[32,128], index: 5, kind: input, shape index: {}]   ;;  %s787_s6 = inlined_call_operand.vmem [shape: f32[32,128], index: 6, kind: output, shape index: {}]  }
   0x1   :  { %v570_v0 = vld [vmem:[%s781_s3 + $0x38] sm:$0xff]  ;;  %v569_v3 = vld [vmem:[%s781_s3 + $0x30] sm:$0xff]  ;;  %v568_v6 = vld [vmem:[%s781_s3 + $0x28] sm:$0xff] }
   0x2   :  { %v578_v1 = vld [vmem:[%s781_s3 + $0x78] sm:$0xff]  ;;  %378 = vmatpush.bf16.msra.mxu0 %v570_v0  ;;  %v577_v4 = vld [vmem:[%s781_s3 + $0x70] sm:$0xff]  ;;  %605 = vmatpush.bf16.msra.mxu3 %v570_v0  ;;  %v576_v7 = vld [vmem:[%s781_s3 + $0x68] sm:$0xff]  ;;  %v695_v17 = vshrl.u32 %v55_v8, 7 }
   0x3   :  { %v586_v2 = vld [vmem:[%s781_s3 + $0xb8] sm:$0xff]  ;;  %397 = vmatpush.bf16.msra.mxu1 %v578_v1  ;;  %v585_v5 = vld [vmem:[%s781_s3 + $0xb0] sm:$0xff]  ;;  %v584_v9 = vld [vmem:[%s781_s3 + $0xa8] sm:$0xff] }
   0x4   :  { %416 = vmatpush.bf16.msra.mxu2 %v586_v2  ;;  %v588_v10 = vld [vmem:[%s782_s0] sm:$0xff]   ;;  %v603_v18 = vld [vmem:[%s782_s0 + $0x8] sm:$0xff]   ;;  %v566_v28 = vld [vmem:[%s781_s3 + $0x18] sm:$0xff]  ;;  %v57_v30 = vadd.s32 8, %v695_v17  ;;  %v58_v36 = vadd.s32 16, %v695_v17  ;;  %v64_v41 = vand.u32 15, %v695_v17 }
   0x5   :  { %v614_v11 = vld [vmem:[%s783_s1] ss:$0 sm:$0xff]  ;;  %v589_v13 = vunpack.c.l.bf16 %v588_v10  ;;  %v590_v14 = vunpack.c.h.bf16 %v588_v10  ;;  %v593_v22 = vunpack.c.l.bf16 %v603_v18  ;;  %v594_v23 = vunpack.c.h.bf16 %v603_v18  ;;  %v574_v29 = vld [vmem:[%s781_s3 + $0x58] sm:$0xff]  ;;  %v565_v39 = vld [vmem:[%s781_s3 + $0x10] sm:$0xff] }
   0x6   :  { %379 = vmatpush.bf16.msra.mxu0 %v569_v3  ;;  %606 = vmatpush.bf16.msra.mxu3 %v569_v3  ;;  %v567_v12 = vld [vmem:[%s781_s3 + $0x20] sm:$0xff]  ;;  %v582_v31 = vld [vmem:[%s781_s3 + $0x98] sm:$0xff]  ;;  %v573_v40 = vld [vmem:[%s781_s3 + $0x50] sm:$0xff]  ;;  %v71_v43 = vand.u32 15, %v57_v30  ;;  %v78_v44 = vand.u32 15, %v58_v36  ;;  %v112_v47 = vadd.s32 4294967295, %v64_v41 }
   0x7   :  { %398 = vmatpush.bf16.msra.mxu1 %v577_v4  ;;  %v615_v15 = vld [vmem:[%s784_s2] ss:$0 sm:$0xff]  ;;  %v35_v20 = vmul.f32 %v614_v11, %v589_v13  ;;  %v36_v21 = vmul.f32 %v614_v11, %v590_v14  ;;  %v37_v26 = vmul.f32 %v614_v11, %v593_v22  ;;  %v38_v27 = vmul.f32 %v614_v11, %v594_v23  ;;  %v581_v42 = vld [vmem:[%s781_s3 + $0x90] sm:$0xff]  ;;  %v564_v45 = vld [vmem:[%s781_s3 + $0x8] sm:$0xff] }
   0x8   :  { %417 = vmatpush.bf16.msra.mxu2 %v585_v5  ;;  %v575_v16 = vld [vmem:[%s781_s3 + $0x60] sm:$0xff]  ;;  %v572_v46 = vld [vmem:[%s781_s3 + $0x48] sm:$0xff]  ;;  %v149_v49 = vadd.s32 1, %v71_v43  ;;  %v114_v50 = vadd.s32 4294967295, %v78_v44  ;;  %vm116_vm0 = vcmp.ge.s32.totalorder %v112_v47, 0  ;;  %v59_v0 = vadd.s32 24, %v695_v17 }
   0x9   :  { %v583_v19 = vld [vmem:[%s781_s3 + $0xa0] sm:$0xff]  ;;  %v703_v24 = vadd.f32 %v615_v15, %v35_v20  ;;  %v44_v25 = vadd.f32 %v615_v15, %v36_v21  ;;  %v716_v34 = vadd.f32 %v615_v15, %v37_v26  ;;  %v718_v35 = vadd.f32 %v615_v15, %v38_v27  ;;  %v580_v48 = vld [vmem:[%s781_s3 + $0x88] sm:$0xff]  ;;  %vm551_vm4 = vmpackc.low %vm617_vm3, %vm116_vm0 }
   0xa   :  { %380 = vmatpush.bf16.msra.mxu0 %v568_v6  ;;  %607 = vmatpush.bf16.msra.mxu3 %v568_v6  ;;  %v563_v51 = vld [vmem:[%s781_s3] sm:$0xff]  ;;  %vm157_vm1 = vcmp.lt.s32.totalorder %v149_v49, 16  ;;  %vm118_vm2 = vcmp.ge.s32.totalorder %v114_v50, 0  ;;  %v85_v1 = vand.u32 15, %v59_v0 }
   0xb   :  { %399 = vmatpush.bf16.msra.mxu1 %v576_v7  ;;  %v47_v32 = vmax.f32 %v703_v24, 0.0  ;;  %v48_v33 = vmax.f32 %v44_v25, 0.0  ;;  %v49_v37 = vmax.f32 %v716_v34, 0.0  ;;  %v50_v38 = vmax.f32 %v718_v35, 0.0  ;;  %v571_v52 = vld [vmem:[%s781_s3 + $0x40] sm:$0xff]  ;;  %vm557_vm5 = vmpackc.low %vm157_vm1, %vm617_vm3 }
   0xc   :  { %418 = vmatpush.bf16.msra.mxu2 %v584_v9  ;;  %v579_v53 = vld [vmem:[%s781_s3 + $0x80] sm:$0xff]  ;;  %vm554_vm6 = vmpackc.low %vm617_vm3, %vm118_vm2  ;;  %v151_v2 = vadd.s32 1, %v85_v1 }
   0xd   :  { %51 = vst [vmem:[#allocation2 + $0x1] sm:$0xff] %v47_v32  ;;  %v177_v61 = vpack.c.bf16 %v48_v33, %v47_v32  ;;  %v180_v5 = vpack.c.bf16 %v50_v38, %v49_v37  ;;  %v616_v7 = vld [vmem:[%s785_s4] ss:$0 sm:$0xff] }
   0xe   :  { %381 = vmatpush.bf16.msra.mxu0 %v567_v12  ;;  %608 = vmatpush.bf16.msra.mxu3 %v567_v12  ;;  %52 = vst [vmem:[#allocation2 + $0x9] sm:$0xff] %v48_v33  ;;  %vm159_vm7 = vcmp.lt.s32.totalorder %v151_v2, 16  ;;  %v596_v11 = vld [vmem:[%s786_s5] sm:$0xff]  }
   0xf   :  { %400 = vmatpush.bf16.msra.mxu1 %v575_v16  ;;  %53 = vst [vmem:[#allocation2 + $0x11] sm:$0xff] %v49_v37  ;;  %vm560_vm8 = vmpackc.low %vm159_vm7, %vm617_vm3  ;;  %v597_v13 = vunpack.c.l.bf16 %v596_v11  ;;  %v598_v21 = vunpack.c.h.bf16 %v596_v11 }
  0x10   :  { %419 = vmatpush.bf16.msra.mxu2 %v583_v19  ;;  %54 = vst [vmem:[#allocation2 + $0x19] sm:$0xff] %v50_v38 }
  0x12   :  { %382 = vmatpush.bf16.msra.mxu0 %v566_v28  ;;  %609 = vmatpush.bf16.msra.mxu3 %v566_v28  ;;  %v604_v28 = vld [vmem:[%s786_s5 + $0x8] sm:$0xff]  }
  0x13   :  { %401 = vmatpush.bf16.msra.mxu1 %v574_v29  ;;  %v601_v30 = vunpack.c.l.bf16 %v604_v28  ;;  %v602_v38 = vunpack.c.h.bf16 %v604_v28 }
  0x14   :  { %420 = vmatpush.bf16.msra.mxu2 %v582_v31  ;;  %v108_v54 = vld [vmem:[#allocation2] sm:$0xff] }
  0x15   :  { %v109_v55 = vld [vmem:[#allocation2 + $0x8] sm:$0xff] }
  0x16   :  { %383 = vmatpush.bf16.msra.mxu0 %v565_v39  ;;  %610 = vmatpush.bf16.msra.mxu3 %v565_v39  ;;  %v144_v56 = vld [vmem:[#allocation2 + $0x2] sm:$0xff]  ;;  %v145_v57 = vld [vmem:[#allocation2 + $0xa] sm:$0xff]  ;;  %v552_v60 = vpack.c.bf16 %v109_v55, %v108_v54 }
  0x17   :  { %402 = vmatpush.bf16.msra.mxu1 %v573_v40  ;;  %v110_v58 = vld [vmem:[#allocation2 + $0x10] sm:$0xff]  ;;  %v111_v59 = vld [vmem:[#allocation2 + $0x18] sm:$0xff]  ;;  %v558_v62 = vpack.c.bf16 %v145_v57, %v144_v56 }
  0x18   :  { %421 = vmatpush.bf16.msra.mxu2 %v581_v42  ;;  %v555_v63 = vpack.c.bf16 %v111_v59, %v110_v58  ;;  %v146_v3 = vld [vmem:[#allocation2 + $0x12] sm:$0xff]  ;;  %v147_v4 = vld [vmem:[#allocation2 + $0x1a] sm:$0xff] }
  0x19   :  { %v561_v6 = vpack.c.bf16 %v147_v4, %v146_v3 }
  0x1a   :  { %384 = vmatpush.bf16.msra.mxu0 %v564_v45  ;;  %611 = vmatpush.bf16.msra.mxu3 %v564_v45 }
  0x1b   :  { %403 = vmatpush.bf16.msra.mxu1 %v572_v46 }
  0x1c   :  { %422 = vmatpush.bf16.msra.mxu2 %v580_v48 }
  0x1e   :  { %385 = vmatpush.bf16.msra.mxu0 %v563_v51  ;;  %612 = vmatpush.bf16.msra.mxu3 %v563_v51 }
  0x1f   :  { %404 = vmatpush.bf16.msra.mxu1 %v571_v52 }
  0x20   :  { %423 = vmatpush.bf16.msra.mxu2 %v579_v53 }
  0x21   :  { %553 = vmatmul.msk.bf16.vlgmr.msra.gmra.mxu0 %vm551_vm4, %v552_v60  ;;  %556 = vmatmul.msk.bf16.vlgmr.msra.gmra.mxu3 %vm554_vm6, %v555_v63 }
  0x22   :  { %405 = vmatmul.bf16.vlgmr.msra.gmra.mxu1 %v177_v61 }
  0x23   :  { %559 = vmatmul.msk.bf16.vlgmr.msra.gmra.mxu2 %vm557_vm5, %v558_v62 }
  0x32   :  { %410 = vmatmul.bf16.gmra.mxu1 %v180_v5 }
  0x33   :  { %562 = vmatmul.msk.bf16.gmra.mxu2 %vm560_vm8, %v561_v6 }
  0x9e   :  { %v387_v8 = vpop.f32.mrf.mxu0 }
  0x9f   :  { %v406_v9 = vpop.f32.mrf.mxu1  ;;  %v388_v10 = vadd.f32 %v616_v7, %v387_v8 }
  0xa1   :  { %v407_v12 = vadd.f32 %v406_v9, %v388_v10 }
  0xa4   :  { %v392_v22 = vpop.f32.mrf.mxu3 }
  0xa5   :  { %v393_v24 = vadd.f32 %v616_v7, %v392_v22 }
  0xa6   :  { %v425_v14 = vpop.f32.mrf.mxu2  ;;  %v389_v16 = vpop.f32.mrf.mxu0 }
  0xa7   :  { %v426_v15 = vadd.f32 %v425_v14, %v407_v12  ;;  %v408_v17 = vpop.f32.mrf.mxu1  ;;  %v390_v19 = vadd.f32 %v616_v7, %v389_v16 }
  0xa9   :  { %v443_v18 = vadd.f32 %v597_v13, %v426_v15  ;;  %v409_v20 = vadd.f32 %v408_v17, %v390_v19 }
  0xab   :  { %447 = vst [vmem:[%s787_s6] sm:$0xff] %v443_v18 }
  0xac   :  { %v394_v33 = vpop.f32.mrf.mxu3 }
  0xad   :  { %v395_v36 = vadd.f32 %v616_v7, %v394_v33 }
  0xae   :  { %v427_v23 = vpop.f32.mrf.mxu2 }
  0xaf   :  { %v428_v25 = vadd.f32 %v427_v23, %v409_v20  ;;  %v411_v26 = vpop.f32.mrf.mxu1 }
  0xb0   :  { %v412_v29 = vadd.f32 %v411_v26, %v393_v24 }
  0xb1   :  { %v444_v27 = vadd.f32 %v598_v21, %v428_v25 }
  0xb3   :  { %448 = vst [vmem:[%s787_s6 + $0x8] sm:$0xff] %v444_v27 }
  0xb6   :  { %v430_v31 = vpop.f32.mrf.mxu2 }
  0xb7   :  { %v431_v32 = vadd.f32 %v430_v31, %v412_v29  ;;  %v413_v35 = vpop.f32.mrf.mxu1 }
  0xb8   :  { %v414_v37 = vadd.f32 %v413_v35, %v395_v36 }
  0xb9   :  { %v445_v34 = vadd.f32 %v601_v30, %v431_v32 }
  0xbb   :  { %449 = vst [vmem:[%s787_s6 + $0x10] sm:$0xff] %v445_v34 }
  0xbe   :  { %v432_v39 = vpop.f32.mrf.mxu2 }
  0xbf   :  { %v433_v40 = vadd.f32 %v432_v39, %v414_v37 }
  0xc1   :  { %v446_v41 = vadd.f32 %v602_v38, %v433_v40 }
  0xc3   :  { %450 = vst [vmem:[%s787_s6 + $0x18] sm:$0xff] %v446_v41 }

</bundles_post_ra>
